<compile_context>
chip_gen: v6e
topology: v6e:2x2x1
jax: 0.10.0
libtpu: 0.0.40
codegen_flags: <defaults>
</compile_context>

<pallas_src>
import math
from functools import partial

import jax
import jax.numpy as jnp
from jax.experimental import pallas as pl
from jax.experimental.pallas import tpu as pltpu


def _layer_norm(x, g, b, eps=1e-6):
    # Matches the repo's custom LayerNorm: a_2 * (x - mean) / (std + eps) + b_2,
    # std Bessel-corrected (torch.Tensor.std default); eps added to std, NOT var.
    mean = jnp.mean(x, axis=-1, keepdims=True)
    var = jnp.sum((x - mean) ** 2, axis=-1, keepdims=True) / (x.shape[-1] - 1)
    std = jnp.sqrt(var)
    inv = pl.reciprocal(std + eps, approx=True)   # EUP slot, off the VPU path
    return g * (x - mean) * inv + b


def _gelu_tanh(x):
    # The repo's custom GELU (tanh approximation).
    return 0.5 * x * (1.0 + jnp.tanh(math.sqrt(2.0 / math.pi) * (x + 0.044715 * x ** 3)))


def _bert_layers_kernel(n_heads,
                        x0_ref,
                        ln1g_ref, ln1b_ref,
                        wq_ref, bq_ref, wk_ref, bk_ref, wv_ref, bv_ref,
                        wo_ref, bo_ref,
                        ln2g_ref, ln2b_ref,
                        w1_ref, b1_ref, w2_ref, b2_ref,
                        out_ref):
    layer = pl.program_id(1)

    # Layer 0: load the embedded input into the carried activation buffer.
    # out_ref's block index is constant along the layer axis, so the block is
    # VMEM-resident for the whole layer loop (resident-accumulator pattern).
    @pl.when(layer == 0)
    def _():
        out_ref[...] = x0_ref[...]

    _, S, H = out_ref.shape
    dk = H // n_heads
    scale = 1.0 / math.sqrt(dk)

    x = out_ref[...].reshape(S, H)                    # flatten tokens (batch tile = 1)

    ln1g = ln1g_ref[0, 0]; ln1b = ln1b_ref[0, 0]
    ln2g = ln2g_ref[0, 0]; ln2b = ln2b_ref[0, 0]
    wq = wq_ref[0]; bq = bq_ref[0, 0]
    wk = wk_ref[0]; bk = bk_ref[0, 0]
    wv = wv_ref[0]; bv = bv_ref[0, 0]
    wo = wo_ref[0]; bo = bo_ref[0, 0]
    w1 = w1_ref[0]; b1 = b1_ref[0, 0]
    w2 = w2_ref[0]; b2 = b2_ref[0, 0]

    # ---- self-attention sublayer (SublayerConnection: x + attn(norm(x))) ----
    h = _layer_norm(x, ln1g, ln1b).astype(jnp.bfloat16)
    q = jnp.dot(h, wq, preferred_element_type=jnp.float32) + bq      # (S, H) f32
    k = jnp.dot(h, wk, preferred_element_type=jnp.float32) + bk
    v = jnp.dot(h, wv, preferred_element_type=jnp.float32) + bv

    # Heads on a leading batch axis -> one batched dot per attention op.
    def split_heads(t):
        return jnp.stack([t[:, n * dk:(n + 1) * dk] for n in range(n_heads)],
                         axis=0).astype(jnp.bfloat16)                # (nh, S, dk)

    qh, kh, vh = split_heads(q), split_heads(k), split_heads(v)
    scores = jnp.einsum('nqd,nkd->nqk', qh, kh,
                        preferred_element_type=jnp.float32) * scale  # (nh, S, S)
    # eval-mode mask is all ones -> masked_fill(mask == 0, -1e9) is a no-op
    scores = scores - jnp.max(scores, axis=-1, keepdims=True)
    p = jnp.exp(scores)
    p = p * pl.reciprocal(jnp.sum(p, axis=-1, keepdims=True), approx=True)
    ctx = jnp.einsum('nqk,nkd->nqd', p.astype(jnp.bfloat16), vh,
                     preferred_element_type=jnp.float32)             # (nh, S, dk)
    ctx = jnp.concatenate([ctx[n] for n in range(n_heads)], axis=-1)  # (S, H)
    attn = jnp.dot(ctx.astype(jnp.bfloat16), wo,
                   preferred_element_type=jnp.float32) + bo          # single out-proj
    x = x + attn                      # dropout = identity (eval)

    # ---- feed-forward sublayer (SublayerConnection: x + ffn(norm(x))) ----
    h2 = _layer_norm(x, ln2g, ln2b).astype(jnp.bfloat16)
    ff = jnp.dot(h2, w1, preferred_element_type=jnp.float32) + b1
    ff = _gelu_tanh(ff).astype(jnp.bfloat16)
    ff = jnp.dot(ff, w2, preferred_element_type=jnp.float32) + b2
    x = x + ff                        # dropout = identity (eval)

    out_ref[...] = x.reshape(out_ref.shape)


def init_params(key, *, input_dim, max_len, hidden, n_layers):
    assert input_dim == hidden, "embedding output feeds transformer blocks directly"
    L, H, F = n_layers, hidden, hidden * 4
    std = 0.02
    ks = jax.random.split(key, 10)

    def w(k, shape):
        return std * jax.random.normal(k, shape, jnp.float32)

    p = {
        "cls": w(ks[0], (1, 1, input_dim)),               # clsToken, normal(std=0.02)
        "pos": w(ks[1], (1, max_len + 1, input_dim)),     # learned positional embedding
        "ln1_g": jnp.ones((L, 1, H), jnp.float32),
        "ln1_b": jnp.zeros((L, 1, H), jnp.float32),
        "wq": w(ks[2], (L, H, H)), "bq": jnp.zeros((L, 1, H), jnp.float32),
        "wk": w(ks[3], (L, H, H)), "bk": jnp.zeros((L, 1, H), jnp.float32),
        "wv": w(ks[4], (L, H, H)), "bv": jnp.zeros((L, 1, H), jnp.float32),
        "wo": w(ks[5], (L, H, H)), "bo": jnp.zeros((L, 1, H), jnp.float32),
        "ln2_g": jnp.ones((L, 1, H), jnp.float32),
        "ln2_b": jnp.zeros((L, 1, H), jnp.float32),
        "w1": w(ks[6], (L, H, F)), "b1": jnp.zeros((L, 1, F), jnp.float32),
        "w2": w(ks[7], (L, F, H)), "b2": jnp.zeros((L, 1, H), jnp.float32),
    }
    return p


def bert5_forward(input_vectors, params, *, n_heads):
    # --- glue (plain JAX): cls-token concat + positional embedding add ---
    B, T, D = input_vectors.shape
    cls = jnp.broadcast_to(params["cls"], (B, 1, D))
    x = jnp.concatenate([cls, input_vectors.astype(jnp.float32)], axis=1)  # (B, T+1, D)
    x = x + params["pos"][:, : x.shape[1], :]                              # BERTEmbedding2
    S, H = x.shape[1], x.shape[2]
    L = params["wq"].shape[0]
    F = params["w1"].shape[-1]
    assert H % n_heads == 0, "hidden must be divisible by attn_heads"

    bf16 = jnp.bfloat16
    kernel = partial(_bert_layers_kernel, n_heads)

    vecH_spec = pl.BlockSpec((1, 1, H), lambda b, l: (l, 0, 0))
    vecF_spec = pl.BlockSpec((1, 1, F), lambda b, l: (l, 0, 0))
    matHH_spec = pl.BlockSpec((1, H, H), lambda b, l: (l, 0, 0))
    matHF_spec = pl.BlockSpec((1, H, F), lambda b, l: (l, 0, 0))
    matFH_spec = pl.BlockSpec((1, F, H), lambda b, l: (l, 0, 0))
    x_spec = pl.BlockSpec((1, S, H), lambda b, l: (b, 0, 0))

    out = pl.pallas_call(
        kernel,
        out_shape=jax.ShapeDtypeStruct((B, S, H), jnp.float32),
        grid_spec=pltpu.PrefetchScalarGridSpec(
            num_scalar_prefetch=0,
            grid=(B, L),                                   # batch tiles outer, layers inner
            in_specs=[x_spec,
                      vecH_spec, vecH_spec,                # ln1 g, b
                      matHH_spec, vecH_spec,               # wq, bq
                      matHH_spec, vecH_spec,               # wk, bk
                      matHH_spec, vecH_spec,               # wv, bv
                      matHH_spec, vecH_spec,               # wo, bo
                      vecH_spec, vecH_spec,                # ln2 g, b
                      matHF_spec, vecF_spec,               # w1, b1
                      matFH_spec, vecH_spec],              # w2, b2
            out_specs=x_spec),
        compiler_params=pltpu.CompilerParams(
            dimension_semantics=("parallel", "arbitrary")),
    )(x.astype(jnp.float32),
      params["ln1_g"], params["ln1_b"],
      params["wq"].astype(bf16), params["bq"],
      params["wk"].astype(bf16), params["bk"],
      params["wv"].astype(bf16), params["bv"],
      params["wo"].astype(bf16), params["bo"],
      params["ln2_g"], params["ln2_b"],
      params["w1"].astype(bf16), params["b1"],
      params["w2"].astype(bf16), params["b2"])

    return out, None  # matches (x, sample); sample is None in eval mode


if __name__ == "__main__":
    # Small shapes consistent with the module: batch=2, max_len=8 (seq=9),
    # hidden=input_dim=32, n_layers=2, attn_heads=4, feed_forward_hidden=128.
    B, MAX_LEN, HIDDEN, N_LAYERS, N_HEADS = 2, 8, 32, 2, 4

    key = jax.random.PRNGKey(0)
    k_param, k_in = jax.random.split(key)
    params = init_params(k_param, input_dim=HIDDEN, max_len=MAX_LEN,
                         hidden=HIDDEN, n_layers=N_LAYERS)
    input_vectors = jax.random.normal(k_in, (B, MAX_LEN, HIDDEN), jnp.float32)

    out, sample = bert5_forward(input_vectors, params, n_heads=N_HEADS)
    out = jax.block_until_ready(out)

    assert out.shape == (B, MAX_LEN + 1, HIDDEN), out.shape
    assert sample is None
    assert bool(jnp.all(jnp.isfinite(out)))
    print("KERNEL_OK")
</pallas_src>

<mosaic_0001>
module attributes {stable_mosaic.version = 11 : i64} {
  func.func @_bert_layers_kernel(%arg0: i32, %arg1: i32, %arg2: memref<1x9x32xf32, #tpu.memory_space<vmem>>, %arg3: memref<1x1x32xf32, #tpu.memory_space<vmem>>, %arg4: memref<1x1x32xf32, #tpu.memory_space<vmem>>, %arg5: memref<1x32x32xbf16, #tpu.memory_space<vmem>>, %arg6: memref<1x1x32xf32, #tpu.memory_space<vmem>>, %arg7: memref<1x32x32xbf16, #tpu.memory_space<vmem>>, %arg8: memref<1x1x32xf32, #tpu.memory_space<vmem>>, %arg9: memref<1x32x32xbf16, #tpu.memory_space<vmem>>, %arg10: memref<1x1x32xf32, #tpu.memory_space<vmem>>, %arg11: memref<1x32x32xbf16, #tpu.memory_space<vmem>>, %arg12: memref<1x1x32xf32, #tpu.memory_space<vmem>>, %arg13: memref<1x1x32xf32, #tpu.memory_space<vmem>>, %arg14: memref<1x1x32xf32, #tpu.memory_space<vmem>>, %arg15: memref<1x32x128xbf16, #tpu.memory_space<vmem>>, %arg16: memref<1x1x128xf32, #tpu.memory_space<vmem>>, %arg17: memref<1x128x32xbf16, #tpu.memory_space<vmem>>, %arg18: memref<1x1x32xf32, #tpu.memory_space<vmem>>, %arg19: memref<1x9x32xf32, #tpu.memory_space<vmem>>) attributes {dimension_semantics = [#tpu.dimension_semantics<parallel>, #tpu.dimension_semantics<arbitrary>], iteration_bounds = array<i64: 2, 2>, scalar_prefetch = 0 : i64, scratch_operands = 0 : i64, tpu.core_type = #tpu.core_type<tc>, window_params = [{transform_indices = @transform_0, window_bounds = array<i64: 1, 9, 32>}, {transform_indices = @transform_1, window_bounds = array<i64: 1, 1, 32>}, {transform_indices = @transform_2, window_bounds = array<i64: 1, 1, 32>}, {transform_indices = @transform_3, window_bounds = array<i64: 1, 32, 32>}, {transform_indices = @transform_4, window_bounds = array<i64: 1, 1, 32>}, {transform_indices = @transform_5, window_bounds = array<i64: 1, 32, 32>}, {transform_indices = @transform_6, window_bounds = array<i64: 1, 1, 32>}, {transform_indices = @transform_7, window_bounds = array<i64: 1, 32, 32>}, {transform_indices = @transform_8, window_bounds = array<i64: 1, 1, 32>}, {transform_indices = @transform_9, window_bounds = array<i64: 1, 32, 32>}, {transform_indices = @transform_10, window_bounds = array<i64: 1, 1, 32>}, {transform_indices = @transform_11, window_bounds = array<i64: 1, 1, 32>}, {transform_indices = @transform_12, window_bounds = array<i64: 1, 1, 32>}, {transform_indices = @transform_13, window_bounds = array<i64: 1, 32, 128>}, {transform_indices = @transform_14, window_bounds = array<i64: 1, 1, 128>}, {transform_indices = @transform_15, window_bounds = array<i64: 1, 128, 32>}, {transform_indices = @transform_16, window_bounds = array<i64: 1, 1, 32>}, {transform_indices = @transform_17, window_bounds = array<i64: 1, 9, 32>}]} {
    %c0_i32 = arith.constant 0 : i32
    %0 = arith.cmpi eq, %arg1, %c0_i32 : i32
    %1 = arith.extui %0 : i1 to i32
    %c0_i32_0 = arith.constant 0 : i32
    %2 = arith.cmpi ne, %1, %c0_i32_0 : i32
    scf.if %2 {
      %c0_78 = arith.constant 0 : index
      %c0_79 = arith.constant 0 : index
      %c0_80 = arith.constant 0 : index
      %186 = vector.load %arg2[%c0_78, %c0_79, %c0_80] : memref<1x9x32xf32, #tpu.memory_space<vmem>>, vector<1x9x32xf32>
      %c0_81 = arith.constant 0 : index
      %c0_82 = arith.constant 0 : index
      %c0_83 = arith.constant 0 : index
      %187 = vector.load %arg19[%c0_81, %c0_82, %c0_83] : memref<1x9x32xf32, #tpu.memory_space<vmem>>, vector<1x9x32xf32>
      tpu.vector_store %arg19[%c0_81, %c0_82, %c0_83], %186 {strides = array<i32>} : memref<1x9x32xf32, #tpu.memory_space<vmem>>, vector<1x9x32xf32>,
    } else {
    }
    %c0 = arith.constant 0 : index
    %c0_1 = arith.constant 0 : index
    %c0_2 = arith.constant 0 : index
    %3 = vector.load %arg19[%c0, %c0_1, %c0_2] : memref<1x9x32xf32, #tpu.memory_space<vmem>>, vector<1x9x32xf32>
    %4 = vector.shape_cast %3 : vector<1x9x32xf32> to vector<9x32xf32>
    %c0_3 = arith.constant 0 : index
    %c0_4 = arith.constant 0 : index
    %c0_5 = arith.constant 0 : index
    %5 = vector.load %arg3[%c0_3, %c0_4, %c0_5] : memref<1x1x32xf32, #tpu.memory_space<vmem>>, vector<1x1x32xf32>
    %6 = vector.shape_cast %5 : vector<1x1x32xf32> to vector<32xf32>
    %c0_6 = arith.constant 0 : index
    %c0_7 = arith.constant 0 : index
    %c0_8 = arith.constant 0 : index
    %7 = vector.load %arg4[%c0_6, %c0_7, %c0_8] : memref<1x1x32xf32, #tpu.memory_space<vmem>>, vector<1x1x32xf32>
    %8 = vector.shape_cast %7 : vector<1x1x32xf32> to vector<32xf32>
    %c0_9 = arith.constant 0 : index
    %c0_10 = arith.constant 0 : index
    %c0_11 = arith.constant 0 : index
    %9 = vector.load %arg13[%c0_9, %c0_10, %c0_11] : memref<1x1x32xf32, #tpu.memory_space<vmem>>, vector<1x1x32xf32>
    %10 = vector.shape_cast %9 : vector<1x1x32xf32> to vector<32xf32>
    %c0_12 = arith.constant 0 : index
    %c0_13 = arith.constant 0 : index
    %c0_14 = arith.constant 0 : index
    %11 = vector.load %arg14[%c0_12, %c0_13, %c0_14] : memref<1x1x32xf32, #tpu.memory_space<vmem>>, vector<1x1x32xf32>
    %12 = vector.shape_cast %11 : vector<1x1x32xf32> to vector<32xf32>
    %c0_15 = arith.constant 0 : index
    %c0_16 = arith.constant 0 : index
    %c0_17 = arith.constant 0 : index
    %13 = vector.load %arg5[%c0_15, %c0_16, %c0_17] : memref<1x32x32xbf16, #tpu.memory_space<vmem>>, vector<1x32x32xbf16>
    %14 = vector.shape_cast %13 : vector<1x32x32xbf16> to vector<32x32xbf16>
    %c0_18 = arith.constant 0 : index
    %c0_19 = arith.constant 0 : index
    %c0_20 = arith.constant 0 : index
    %15 = vector.load %arg6[%c0_18, %c0_19, %c0_20] : memref<1x1x32xf32, #tpu.memory_space<vmem>>, vector<1x1x32xf32>
    %16 = vector.shape_cast %15 : vector<1x1x32xf32> to vector<32xf32>
    %c0_21 = arith.constant 0 : index
    %c0_22 = arith.constant 0 : index
    %c0_23 = arith.constant 0 : index
    %17 = vector.load %arg7[%c0_21, %c0_22, %c0_23] : memref<1x32x32xbf16, #tpu.memory_space<vmem>>, vector<1x32x32xbf16>
    %18 = vector.shape_cast %17 : vector<1x32x32xbf16> to vector<32x32xbf16>
    %c0_24 = arith.constant 0 : index
    %c0_25 = arith.constant 0 : index
    %c0_26 = arith.constant 0 : index
    %19 = vector.load %arg8[%c0_24, %c0_25, %c0_26] : memref<1x1x32xf32, #tpu.memory_space<vmem>>, vector<1x1x32xf32>
    %20 = vector.shape_cast %19 : vector<1x1x32xf32> to vector<32xf32>
    %c0_27 = arith.constant 0 : index
    %c0_28 = arith.constant 0 : index
    %c0_29 = arith.constant 0 : index
    %21 = vector.load %arg9[%c0_27, %c0_28, %c0_29] : memref<1x32x32xbf16, #tpu.memory_space<vmem>>, vector<1x32x32xbf16>
    %22 = vector.shape_cast %21 : vector<1x32x32xbf16> to vector<32x32xbf16>
    %c0_30 = arith.constant 0 : index
    %c0_31 = arith.constant 0 : index
    %c0_32 = arith.constant 0 : index
    %23 = vector.load %arg10[%c0_30, %c0_31, %c0_32] : memref<1x1x32xf32, #tpu.memory_space<vmem>>, vector<1x1x32xf32>
    %24 = vector.shape_cast %23 : vector<1x1x32xf32> to vector<32xf32>
    %c0_33 = arith.constant 0 : index
    %c0_34 = arith.constant 0 : index
    %c0_35 = arith.constant 0 : index
    %25 = vector.load %arg11[%c0_33, %c0_34, %c0_35] : memref<1x32x32xbf16, #tpu.memory_space<vmem>>, vector<1x32x32xbf16>
    %26 = vector.shape_cast %25 : vector<1x32x32xbf16> to vector<32x32xbf16>
    %c0_36 = arith.constant 0 : index
    %c0_37 = arith.constant 0 : index
    %c0_38 = arith.constant 0 : index
    %27 = vector.load %arg12[%c0_36, %c0_37, %c0_38] : memref<1x1x32xf32, #tpu.memory_space<vmem>>, vector<1x1x32xf32>
    %28 = vector.shape_cast %27 : vector<1x1x32xf32> to vector<32xf32>
    %c0_39 = arith.constant 0 : index
    %c0_40 = arith.constant 0 : index
    %c0_41 = arith.constant 0 : index
    %29 = vector.load %arg15[%c0_39, %c0_40, %c0_41] : memref<1x32x128xbf16, #tpu.memory_space<vmem>>, vector<1x32x128xbf16>
    %30 = vector.shape_cast %29 : vector<1x32x128xbf16> to vector<32x128xbf16>
    %c0_42 = arith.constant 0 : index
    %c0_43 = arith.constant 0 : index
    %c0_44 = arith.constant 0 : index
    %31 = vector.load %arg16[%c0_42, %c0_43, %c0_44] : memref<1x1x128xf32, #tpu.memory_space<vmem>>, vector<1x1x128xf32>
    %32 = vector.shape_cast %31 : vector<1x1x128xf32> to vector<128xf32>
    %c0_45 = arith.constant 0 : index
    %c0_46 = arith.constant 0 : index
    %c0_47 = arith.constant 0 : index
    %33 = vector.load %arg17[%c0_45, %c0_46, %c0_47] : memref<1x128x32xbf16, #tpu.memory_space<vmem>>, vector<1x128x32xbf16>
    %34 = vector.shape_cast %33 : vector<1x128x32xbf16> to vector<128x32xbf16>
    %c0_48 = arith.constant 0 : index
    %c0_49 = arith.constant 0 : index
    %c0_50 = arith.constant 0 : index
    %35 = vector.load %arg18[%c0_48, %c0_49, %c0_50] : memref<1x1x32xf32, #tpu.memory_space<vmem>>, vector<1x1x32xf32>
    %36 = vector.shape_cast %35 : vector<1x1x32xf32> to vector<32xf32>
    %cst = arith.constant dense<0.000000e+00> : vector<9xf32>
    %37 = vector.multi_reduction <add>, %4, %cst [1] : vector<9x32xf32> to vector<9xf32>
    %38 = vector.shape_cast %37 : vector<9xf32> to vector<9x1xf32>
    %cst_51 = arith.constant 3.200000e+01 : f32
    %39 = vector.broadcast %cst_51 : f32 to vector<9x1xf32>
    %40 = arith.divf %38, %39 : vector<9x1xf32>
    %41 = vector.broadcast %40 : vector<9x1xf32> to vector<9x32xf32>
    %42 = arith.subf %4, %41 : vector<9x32xf32>
    %43 = arith.mulf %42, %42 : vector<9x32xf32>
    %cst_52 = arith.constant dense<0.000000e+00> : vector<9xf32>
    %44 = vector.multi_reduction <add>, %43, %cst_52 [1] : vector<9x32xf32> to vector<9xf32>
    %45 = vector.shape_cast %44 : vector<9xf32> to vector<9x1xf32>
    %cst_53 = arith.constant 3.100000e+01 : f32
    %46 = vector.broadcast %cst_53 : f32 to vector<9x1xf32>
    %47 = arith.divf %45, %46 : vector<9x1xf32>
    %48 = math.sqrt %47 : vector<9x1xf32>
    %cst_54 = arith.constant 9.99999997E-7 : f32
    %49 = vector.broadcast %cst_54 : f32 to vector<9x1xf32>
    %50 = arith.addf %48, %49 : vector<9x1xf32>
    %51 = tpu.reciprocal %50 {approx = true} : vector<9x1xf32> -> vector<9x1xf32>
    %52 = vector.broadcast %40 : vector<9x1xf32> to vector<9x32xf32>
    %53 = arith.subf %4, %52 : vector<9x32xf32>
    %54 = vector.shape_cast %6 : vector<32xf32> to vector<1x32xf32>
    %55 = vector.broadcast %54 : vector<1x32xf32> to vector<9x32xf32>
    %56 = arith.mulf %55, %53 : vector<9x32xf32>
    %57 = vector.broadcast %51 : vector<9x1xf32> to vector<9x32xf32>
    %58 = arith.mulf %56, %57 : vector<9x32xf32>
    %59 = vector.shape_cast %8 : vector<32xf32> to vector<1x32xf32>
    %60 = vector.broadcast %59 : vector<1x32xf32> to vector<9x32xf32>
    %61 = arith.addf %58, %60 : vector<9x32xf32>
    %62 = arith.truncf %61 : vector<9x32xf32> to vector<9x32xbf16>
    %cst_55 = arith.constant dense<0.000000e+00> : vector<9x32xf32>
    %63 = tpu.matmul %62, %14, %cst_55 {dimension_numbers = #tpu.dot_dimension_numbers<[1], [0], [0], [1], [0, 0, 1, 1], [], []>} : vector<9x32xbf16>, vector<32x32xbf16>, vector<9x32xf32> -> vector<9x32xf32>
    %64 = vector.shape_cast %16 : vector<32xf32> to vector<1x32xf32>
    %65 = vector.broadcast %64 : vector<1x32xf32> to vector<9x32xf32>
    %66 = arith.addf %63, %65 : vector<9x32xf32>
    %cst_56 = arith.constant dense<0.000000e+00> : vector<9x32xf32>
    %67 = tpu.matmul %62, %18, %cst_56 {dimension_numbers = #tpu.dot_dimension_numbers<[1], [0], [0], [1], [0, 0, 1, 1], [], []>} : vector<9x32xbf16>, vector<32x32xbf16>, vector<9x32xf32> -> vector<9x32xf32>
    %68 = vector.shape_cast %20 : vector<32xf32> to vector<1x32xf32>
    %69 = vector.broadcast %68 : vector<1x32xf32> to vector<9x32xf32>
    %70 = arith.addf %67, %69 : vector<9x32xf32>
    %cst_57 = arith.constant dense<0.000000e+00> : vector<9x32xf32>
    %71 = tpu.matmul %62, %22, %cst_57 {dimension_numbers = #tpu.dot_dimension_numbers<[1], [0], [0], [1], [0, 0, 1, 1], [], []>} : vector<9x32xbf16>, vector<32x32xbf16>, vector<9x32xf32> -> vector<9x32xf32>
    %72 = vector.shape_cast %24 : vector<32xf32> to vector<1x32xf32>
    %73 = vector.broadcast %72 : vector<1x32xf32> to vector<9x32xf32>
    %74 = arith.addf %71, %73 : vector<9x32xf32>
    %75 = vector.extract_strided_slice %66 {offsets = [0, 0], sizes = [9, 8], strides = [1, 1]} : vector<9x32xf32> to vector<9x8xf32>
    %76 = vector.extract_strided_slice %66 {offsets = [0, 8], sizes = [9, 8], strides = [1, 1]} : vector<9x32xf32> to vector<9x8xf32>
    %77 = vector.extract_strided_slice %66 {offsets = [0, 16], sizes = [9, 8], strides = [1, 1]} : vector<9x32xf32> to vector<9x8xf32>
    %78 = vector.extract_strided_slice %66 {offsets = [0, 24], sizes = [9, 8], strides = [1, 1]} : vector<9x32xf32> to vector<9x8xf32>
    %79 = vector.shape_cast %75 : vector<9x8xf32> to vector<1x9x8xf32>
    %80 = vector.shape_cast %76 : vector<9x8xf32> to vector<1x9x8xf32>
    %81 = vector.shape_cast %77 : vector<9x8xf32> to vector<1x9x8xf32>
    %82 = vector.shape_cast %78 : vector<9x8xf32> to vector<1x9x8xf32>
    %83 = tpu.concatenate %79, %80, %81, %82 in 0 : vector<1x9x8xf32>, vector<1x9x8xf32>, vector<1x9x8xf32>, vector<1x9x8xf32> -> vector<4x9x8xf32>
    %84 = arith.truncf %83 : vector<4x9x8xf32> to vector<4x9x8xbf16>
    %85 = vector.extract_strided_slice %70 {offsets = [0, 0], sizes = [9, 8], strides = [1, 1]} : vector<9x32xf32> to vector<9x8xf32>
    %86 = vector.extract_strided_slice %70 {offsets = [0, 8], sizes = [9, 8], strides = [1, 1]} : vector<9x32xf32> to vector<9x8xf32>
    %87 = vector.extract_strided_slice %70 {offsets = [0, 16], sizes = [9, 8], strides = [1, 1]} : vector<9x32xf32> to vector<9x8xf32>
    %88 = vector.extract_strided_slice %70 {offsets = [0, 24], sizes = [9, 8], strides = [1, 1]} : vector<9x32xf32> to vector<9x8xf32>
    %89 = vector.shape_cast %85 : vector<9x8xf32> to vector<1x9x8xf32>
    %90 = vector.shape_cast %86 : vector<9x8xf32> to vector<1x9x8xf32>
    %91 = vector.shape_cast %87 : vector<9x8xf32> to vector<1x9x8xf32>
    %92 = vector.shape_cast %88 : vector<9x8xf32> to vector<1x9x8xf32>
    %93 = tpu.concatenate %89, %90, %91, %92 in 0 : vector<1x9x8xf32>, vector<1x9x8xf32>, vector<1x9x8xf32>, vector<1x9x8xf32> -> vector<4x9x8xf32>
    %94 = arith.truncf %93 : vector<4x9x8xf32> to vector<4x9x8xbf16>
    %95 = vector.extract_strided_slice %74 {offsets = [0, 0], sizes = [9, 8], strides = [1, 1]} : vector<9x32xf32> to vector<9x8xf32>
    %96 = vector.extract_strided_slice %74 {offsets = [0, 8], sizes = [9, 8], strides = [1, 1]} : vector<9x32xf32> to vector<9x8xf32>
    %97 = vector.extract_strided_slice %74 {offsets = [0, 16], sizes = [9, 8], strides = [1, 1]} : vector<9x32xf32> to vector<9x8xf32>
    %98 = vector.extract_strided_slice %74 {offsets = [0, 24], sizes = [9, 8], strides = [1, 1]} : vector<9x32xf32> to vector<9x8xf32>
    %99 = vector.shape_cast %95 : vector<9x8xf32> to vector<1x9x8xf32>
    %100 = vector.shape_cast %96 : vector<9x8xf32> to vector<1x9x8xf32>
    %101 = vector.shape_cast %97 : vector<9x8xf32> to vector<1x9x8xf32>
    %102 = vector.shape_cast %98 : vector<9x8xf32> to vector<1x9x8xf32>
    %103 = tpu.concatenate %99, %100, %101, %102 in 0 : vector<1x9x8xf32>, vector<1x9x8xf32>, vector<1x9x8xf32>, vector<1x9x8xf32> -> vector<4x9x8xf32>
    %104 = arith.truncf %103 : vector<4x9x8xf32> to vector<4x9x8xbf16>
    "tpu.trace_start"() <{level = 10 : i32, message = "nqd,nkd->nqk"}> : () -> ()
    %cst_58 = arith.constant dense<0.000000e+00> : vector<4x9x9xf32>
    %105 = tpu.matmul %84, %94, %cst_58 {dimension_numbers = #tpu.dot_dimension_numbers<[2], [2], [1], [1], [0, 0, 0, 1, 1, 1], [0], [0]>} : vector<4x9x8xbf16>, vector<4x9x8xbf16>, vector<4x9x9xf32> -> vector<4x9x9xf32>
    "tpu.trace_stop"() : () -> ()
    %cst_59 = arith.constant 0.353553385 : f32
    %106 = vector.broadcast %cst_59 : f32 to vector<4x9x9xf32>
    %107 = arith.mulf %105, %106 : vector<4x9x9xf32>
    %cst_60 = arith.constant dense<0xFF800000> : vector<4x9xf32>
    %108 = vector.multi_reduction <maximumf>, %107, %cst_60 [2] : vector<4x9x9xf32> to vector<4x9xf32>
    %109 = vector.shape_cast %108 : vector<4x9xf32> to vector<4x9x1xf32>
    %110 = vector.broadcast %109 : vector<4x9x1xf32> to vector<4x9x9xf32>
    %111 = arith.subf %107, %110 : vector<4x9x9xf32>
    %112 = math.exp %111 : vector<4x9x9xf32>
    %cst_61 = arith.constant dense<0.000000e+00> : vector<4x9xf32>
    %113 = vector.multi_reduction <add>, %112, %cst_61 [2] : vector<4x9x9xf32> to vector<4x9xf32>
    %114 = vector.shape_cast %113 : vector<4x9xf32> to vector<4x9x1xf32>
    %115 = tpu.reciprocal %114 {approx = true} : vector<4x9x1xf32> -> vector<4x9x1xf32>
    %116 = vector.broadcast %115 : vector<4x9x1xf32> to vector<4x9x9xf32>
    %117 = arith.mulf %112, %116 : vector<4x9x9xf32>
    %118 = arith.truncf %117 : vector<4x9x9xf32> to vector<4x9x9xbf16>
    "tpu.trace_start"() <{level = 10 : i32, message = "nqk,nkd->nqd"}> : () -> ()
    %cst_62 = arith.constant dense<0.000000e+00> : vector<4x9x8xf32>
    %119 = tpu.matmul %118, %104, %cst_62 {dimension_numbers = #tpu.dot_dimension_numbers<[2], [1], [1], [2], [0, 0, 0, 1, 1, 2], [0], [0]>} : vector<4x9x9xbf16>, vector<4x9x8xbf16>, vector<4x9x8xf32> -> vector<4x9x8xf32>
    "tpu.trace_stop"() : () -> ()
    %120 = vector.extract_strided_slice %119 {offsets = [0, 0, 0], sizes = [1, 9, 8], strides = [1, 1, 1]} : vector<4x9x8xf32> to vector<1x9x8xf32>
    %121 = vector.shape_cast %120 : vector<1x9x8xf32> to vector<9x8xf32>
    %122 = vector.extract_strided_slice %119 {offsets = [1, 0, 0], sizes = [1, 9, 8], strides = [1, 1, 1]} : vector<4x9x8xf32> to vector<1x9x8xf32>
    %123 = vector.shape_cast %122 : vector<1x9x8xf32> to vector<9x8xf32>
    %124 = vector.extract_strided_slice %119 {offsets = [2, 0, 0], sizes = [1, 9, 8], strides = [1, 1, 1]} : vector<4x9x8xf32> to vector<1x9x8xf32>
    %125 = vector.shape_cast %124 : vector<1x9x8xf32> to vector<9x8xf32>
    %126 = vector.extract_strided_slice %119 {offsets = [3, 0, 0], sizes = [1, 9, 8], strides = [1, 1, 1]} : vector<4x9x8xf32> to vector<1x9x8xf32>
    %127 = vector.shape_cast %126 : vector<1x9x8xf32> to vector<9x8xf32>
    %128 = tpu.concatenate %121, %123, %125, %127 in 1 : vector<9x8xf32>, vector<9x8xf32>, vector<9x8xf32>, vector<9x8xf32> -> vector<9x32xf32>
    %129 = arith.truncf %128 : vector<9x32xf32> to vector<9x32xbf16>
    %cst_63 = arith.constant dense<0.000000e+00> : vector<9x32xf32>
    %130 = tpu.matmul %129, %26, %cst_63 {dimension_numbers = #tpu.dot_dimension_numbers<[1], [0], [0], [1], [0, 0, 1, 1], [], []>} : vector<9x32xbf16>, vector<32x32xbf16>, vector<9x32xf32> -> vector<9x32xf32>
    %131 = vector.shape_cast %28 : vector<32xf32> to vector<1x32xf32>
    %132 = vector.broadcast %131 : vector<1x32xf32> to vector<9x32xf32>
    %133 = arith.addf %130, %132 : vector<9x32xf32>
    %134 = arith.addf %4, %133 : vector<9x32xf32>
    %cst_64 = arith.constant dense<0.000000e+00> : vector<9xf32>
    %135 = vector.multi_reduction <add>, %134, %cst_64 [1] : vector<9x32xf32> to vector<9xf32>
    %136 = vector.shape_cast %135 : vector<9xf32> to vector<9x1xf32>
    %cst_65 = arith.constant 3.200000e+01 : f32
    %137 = vector.broadcast %cst_65 : f32 to vector<9x1xf32>
    %138 = arith.divf %136, %137 : vector<9x1xf32>
    %139 = vector.broadcast %138 : vector<9x1xf32> to vector<9x32xf32>
    %140 = arith.subf %134, %139 : vector<9x32xf32>
    %141 = arith.mulf %140, %140 : vector<9x32xf32>
    %cst_66 = arith.constant dense<0.000000e+00> : vector<9xf32>
    %142 = vector.multi_reduction <add>, %141, %cst_66 [1] : vector<9x32xf32> to vector<9xf32>
    %143 = vector.shape_cast %142 : vector<9xf32> to vector<9x1xf32>
    %cst_67 = arith.constant 3.100000e+01 : f32
    %144 = vector.broadcast %cst_67 : f32 to vector<9x1xf32>
    %145 = arith.divf %143, %144 : vector<9x1xf32>
    %146 = math.sqrt %145 : vector<9x1xf32>
    %cst_68 = arith.constant 9.99999997E-7 : f32
    %147 = vector.broadcast %cst_68 : f32 to vector<9x1xf32>
    %148 = arith.addf %146, %147 : vector<9x1xf32>
    %149 = tpu.reciprocal %148 {approx = true} : vector<9x1xf32> -> vector<9x1xf32>
    %150 = vector.broadcast %138 : vector<9x1xf32> to vector<9x32xf32>
    %151 = arith.subf %134, %150 : vector<9x32xf32>
    %152 = vector.shape_cast %10 : vector<32xf32> to vector<1x32xf32>
    %153 = vector.broadcast %152 : vector<1x32xf32> to vector<9x32xf32>
    %154 = arith.mulf %153, %151 : vector<9x32xf32>
    %155 = vector.broadcast %149 : vector<9x1xf32> to vector<9x32xf32>
    %156 = arith.mulf %154, %155 : vector<9x32xf32>
    %157 = vector.shape_cast %12 : vector<32xf32> to vector<1x32xf32>
    %158 = vector.broadcast %157 : vector<1x32xf32> to vector<9x32xf32>
    %159 = arith.addf %156, %158 : vector<9x32xf32>
    %160 = arith.truncf %159 : vector<9x32xf32> to vector<9x32xbf16>
    %cst_69 = arith.constant dense<0.000000e+00> : vector<9x128xf32>
    %161 = tpu.matmul %160, %30, %cst_69 {dimension_numbers = #tpu.dot_dimension_numbers<[1], [0], [0], [1], [0, 0, 1, 1], [], []>} : vector<9x32xbf16>, vector<32x128xbf16>, vector<9x128xf32> -> vector<9x128xf32>
    %162 = vector.shape_cast %32 : vector<128xf32> to vector<1x128xf32>
    %163 = vector.broadcast %162 : vector<1x128xf32> to vector<9x128xf32>
    %164 = arith.addf %161, %163 : vector<9x128xf32>
    %cst_70 = arith.constant 5.000000e-01 : f32
    %165 = vector.broadcast %cst_70 : f32 to vector<9x128xf32>
    %166 = arith.mulf %165, %164 : vector<9x128xf32>
    %167 = arith.mulf %164, %164 : vector<9x128xf32>
    %168 = arith.mulf %164, %167 : vector<9x128xf32>
    %cst_71 = arith.constant 4.471500e-02 : f32
    %169 = vector.broadcast %cst_71 : f32 to vector<9x128xf32>
    %170 = arith.mulf %169, %168 : vector<9x128xf32>
    %171 = arith.addf %164, %170 : vector<9x128xf32>
    %cst_72 = arith.constant 0.797884583 : f32
    %172 = vector.broadcast %cst_72 : f32 to vector<9x128xf32>
    %173 = arith.mulf %172, %171 : vector<9x128xf32>
    %174 = math.tanh %173 : vector<9x128xf32>
    %cst_73 = arith.constant 1.000000e+00 : f32
    %175 = vector.broadcast %cst_73 : f32 to vector<9x128xf32>
    %176 = arith.addf %175, %174 : vector<9x128xf32>
    %177 = arith.mulf %166, %176 : vector<9x128xf32>
    %178 = arith.truncf %177 : vector<9x128xf32> to vector<9x128xbf16>
    %cst_74 = arith.constant dense<0.000000e+00> : vector<9x32xf32>
    %179 = tpu.matmul %178, %34, %cst_74 {dimension_numbers = #tpu.dot_dimension_numbers<[1], [0], [0], [1], [0, 0, 1, 1], [], []>} : vector<9x128xbf16>, vector<128x32xbf16>, vector<9x32xf32> -> vector<9x32xf32>
    %180 = vector.shape_cast %36 : vector<32xf32> to vector<1x32xf32>
    %181 = vector.broadcast %180 : vector<1x32xf32> to vector<9x32xf32>
    %182 = arith.addf %179, %181 : vector<9x32xf32>
    %183 = arith.addf %134, %182 : vector<9x32xf32>
    %184 = vector.shape_cast %183 : vector<9x32xf32> to vector<1x9x32xf32>
    %c0_75 = arith.constant 0 : index
    %c0_76 = arith.constant 0 : index
    %c0_77 = arith.constant 0 : index
    %185 = vector.load %arg19[%c0_75, %c0_76, %c0_77] : memref<1x9x32xf32, #tpu.memory_space<vmem>>, vector<1x9x32xf32>
    tpu.vector_store %arg19[%c0_75, %c0_76, %c0_77], %184 {strides = array<i32>} : memref<1x9x32xf32, #tpu.memory_space<vmem>>, vector<1x9x32xf32>,
    return
  }
  func.func @transform_0(%arg0: i32, %arg1: i32) -> (i32, i32, i32) {
    %c0_i32 = arith.constant 0 : i32
    %c0_i32_0 = arith.constant 0 : i32
    %c0_i32_1 = arith.constant 0 : i32
    return %arg0, %c0_i32, %c0_i32_0 : i32, i32, i32
  }
  func.func @transform_1(%arg0: i32, %arg1: i32) -> (i32, i32, i32) {
    %c0_i32 = arith.constant 0 : i32
    %c0_i32_0 = arith.constant 0 : i32
    %c0_i32_1 = arith.constant 0 : i32
    return %arg1, %c0_i32, %c0_i32_0 : i32, i32, i32
  }
  func.func @transform_2(%arg0: i32, %arg1: i32) -> (i32, i32, i32) {
    %c0_i32 = arith.constant 0 : i32
    %c0_i32_0 = arith.constant 0 : i32
    %c0_i32_1 = arith.constant 0 : i32
    return %arg1, %c0_i32, %c0_i32_0 : i32, i32, i32
  }
  func.func @transform_3(%arg0: i32, %arg1: i32) -> (i32, i32, i32) {
    %c0_i32 = arith.constant 0 : i32
    %c0_i32_0 = arith.constant 0 : i32
    %c0_i32_1 = arith.constant 0 : i32
    return %arg1, %c0_i32, %c0_i32_0 : i32, i32, i32
  }
  func.func @transform_4(%arg0: i32, %arg1: i32) -> (i32, i32, i32) {
    %c0_i32 = arith.constant 0 : i32
    %c0_i32_0 = arith.constant 0 : i32
    %c0_i32_1 = arith.constant 0 : i32
    return %arg1, %c0_i32, %c0_i32_0 : i32, i32, i32
  }
  func.func @transform_5(%arg0: i32, %arg1: i32) -> (i32, i32, i32) {
    %c0_i32 = arith.constant 0 : i32
    %c0_i32_0 = arith.constant 0 : i32
    %c0_i32_1 = arith.constant 0 : i32
    return %arg1, %c0_i32, %c0_i32_0 : i32, i32, i32
  }
  func.func @transform_6(%arg0: i32, %arg1: i32) -> (i32, i32, i32) {
    %c0_i32 = arith.constant 0 : i32
    %c0_i32_0 = arith.constant 0 : i32
    %c0_i32_1 = arith.constant 0 : i32
    return %arg1, %c0_i32, %c0_i32_0 : i32, i32, i32
  }
  func.func @transform_7(%arg0: i32, %arg1: i32) -> (i32, i32, i32) {
    %c0_i32 = arith.constant 0 : i32
    %c0_i32_0 = arith.constant 0 : i32
    %c0_i32_1 = arith.constant 0 : i32
    return %arg1, %c0_i32, %c0_i32_0 : i32, i32, i32
  }
  func.func @transform_8(%arg0: i32, %arg1: i32) -> (i32, i32, i32) {
    %c0_i32 = arith.constant 0 : i32
    %c0_i32_0 = arith.constant 0 : i32
    %c0_i32_1 = arith.constant 0 : i32
    return %arg1, %c0_i32, %c0_i32_0 : i32, i32, i32
  }
  func.func @transform_9(%arg0: i32, %arg1: i32) -> (i32, i32, i32) {
    %c0_i32 = arith.constant 0 : i32
    %c0_i32_0 = arith.constant 0 : i32
    %c0_i32_1 = arith.constant 0 : i32
    return %arg1, %c0_i32, %c0_i32_0 : i32, i32, i32
  }
  func.func @transform_10(%arg0: i32, %arg1: i32) -> (i32, i32, i32) {
    %c0_i32 = arith.constant 0 : i32
    %c0_i32_0 = arith.constant 0 : i32
    %c0_i32_1 = arith.constant 0 : i32
    return %arg1, %c0_i32, %c0_i32_0 : i32, i32, i32
  }
  func.func @transform_11(%arg0: i32, %arg1: i32) -> (i32, i32, i32) {
    %c0_i32 = arith.constant 0 : i32
    %c0_i32_0 = arith.constant 0 : i32
    %c0_i32_1 = arith.constant 0 : i32
    return %arg1, %c0_i32, %c0_i32_0 : i32, i32, i32
  }
  func.func @transform_12(%arg0: i32, %arg1: i32) -> (i32, i32, i32) {
    %c0_i32 = arith.constant 0 : i32
    %c0_i32_0 = arith.constant 0 : i32
    %c0_i32_1 = arith.constant 0 : i32
    return %arg1, %c0_i32, %c0_i32_0 : i32, i32, i32
  }
  func.func @transform_13(%arg0: i32, %arg1: i32) -> (i32, i32, i32) {
    %c0_i32 = arith.constant 0 : i32
    %c0_i32_0 = arith.constant 0 : i32
    %c0_i32_1 = arith.constant 0 : i32
    return %arg1, %c0_i32, %c0_i32_0 : i32, i32, i32
  }
  func.func @transform_14(%arg0: i32, %arg1: i32) -> (i32, i32, i32) {
    %c0_i32 = arith.constant 0 : i32
    %c0_i32_0 = arith.constant 0 : i32
    %c0_i32_1 = arith.constant 0 : i32
    return %arg1, %c0_i32, %c0_i32_0 : i32, i32, i32
  }
  func.func @transform_15(%arg0: i32, %arg1: i32) -> (i32, i32, i32) {
    %c0_i32 = arith.constant 0 : i32
    %c0_i32_0 = arith.constant 0 : i32
    %c0_i32_1 = arith.constant 0 : i32
    return %arg1, %c0_i32, %c0_i32_0 : i32, i32, i32
  }
  func.func @transform_16(%arg0: i32, %arg1: i32) -> (i32, i32, i32) {
    %c0_i32 = arith.constant 0 : i32
    %c0_i32_0 = arith.constant 0 : i32
    %c0_i32_1 = arith.constant 0 : i32
    return %arg1, %c0_i32, %c0_i32_0 : i32, i32, i32
  }
  func.func @transform_17(%arg0: i32, %arg1: i32) -> (i32, i32, i32) {
    %c0_i32 = arith.constant 0 : i32
    %c0_i32_0 = arith.constant 0 : i32
    %c0_i32_1 = arith.constant 0 : i32
    return %arg0, %c0_i32, %c0_i32_0 : i32, i32, i32
  }
}

</mosaic_0001>

<bundles_post_ra>
// kernel: tpu_custom_call.1
= control target key start
LH: loop header
LB: loop body
LE: loop exit
PB: predicated region body
PF: predicated region fallthrough
CT: control target
= control target key end

     0   :  { %s2777_s24 = smov 0   ;;  %s2779_s25 = smov 0   ;;  %s3130_s0 = inlined_call_operand.vmem [shape: f32[2,9,32], index: 0, kind: input, shape index: {}]   ;;  %s3131_s1 = inlined_call_operand.vmem [shape: f32[2,1,32], index: 1, kind: input, shape index: {}]   ;;  %s3132_s2 = inlined_call_operand.vmem [shape: f32[2,1,32], index: 2, kind: input, shape index: {}]   ;;  %s3133_s3 = inlined_call_operand.vmem [shape: bf16[2,32,32], index: 3, kind: input, shape index: {}]   ;;  %s3134_s4 = inlined_call_operand.vmem [shape: f32[2,1,32], index: 4, kind: input, shape index: {}]   ;;  %s3135_s5 = inlined_call_operand.vmem [shape: bf16[2,32,32], index: 5, kind: input, shape index: {}]   ;;  %s3136_s6 = inlined_call_operand.vmem [shape: f32[2,1,32], index: 6, kind: input, shape index: {}]   ;;  %s3137_s7 = inlined_call_operand.vmem [shape: bf16[2,32,32], index: 7, kind: input, shape index: {}]   ;;  %s3138_s8 = inlined_call_operand.vmem [shape: f32[2,1,32], index: 8, kind: input, shape index: {}]   ;;  %s3139_s9 = inlined_call_operand.vmem [shape: bf16[2,32,32], index: 9, kind: input, shape index: {}]   ;;  %s3140_s10 = inlined_call_operand.vmem [shape: f32[2,1,32], index: 10, kind: input, shape index: {}]   ;;  %s3141_s11 = inlined_call_operand.vmem [shape: f32[2,1,32], index: 11, kind: input, shape index: {}]   ;;  %s3142_s12 = inlined_call_operand.vmem [shape: f32[2,1,32], index: 12, kind: input, shape index: {}]   ;;  %s3143_s13 = inlined_call_operand.vmem [shape: bf16[2,32,128], index: 13, kind: input, shape index: {}]   ;;  %s3144_s14 = inlined_call_operand.vmem [shape: f32[2,1,128], index: 14, kind: input, shape index: {}]   ;;  %s3145_s15 = inlined_call_operand.vmem [shape: bf16[2,128,32], index: 15, kind: input, shape index: {}]   ;;  %s3146_s16 = inlined_call_operand.vmem [shape: f32[2,1,32], index: 16, kind: input, shape index: {}]   ;;  %s3147_s17 = inlined_call_operand.vmem [shape: f32[2,9,32], index: 17, kind: output, shape index: {}]  }
   0x1   :  { %3153 = sst [smem:[#allocation9_spill]] %s3130_s0  ;;  %s2781_s26 = smov 0  }
   0x2   :  { %3154 = sst [smem:[#allocation10_spill]] %s3131_s1  ;;  %s2783_s27 = smov 0  }
   0x3   :  { %3155 = sst [smem:[#allocation11_spill]] %s3133_s3  ;;  %s2785_s28 = smov 0  }
   0x4   :  { %3156 = sst [smem:[#allocation12_spill]] %s3135_s5 }
   0x5   :  { %3157 = sst [smem:[#allocation13_spill]] %s3136_s6 }
   0x6   :  { %3158 = sst [smem:[#allocation14_spill]] %s3137_s7 }
   0x7   :  { %3159 = sst [smem:[#allocation15_spill]] %s3139_s9 }
   0x8   :  { %3160 = sst [smem:[#allocation16_spill]] %s3140_s10 }
   0x9   :  { %3161 = sst [smem:[#allocation17_spill]] %s3141_s11 }
   0xa   :  { %3162 = sst [smem:[#allocation18_spill]] %s3144_s14 }
   0xb   :  { %3163 = sst [smem:[#allocation19_spill]] %s3145_s15 }
   0xc   :  { %3164 = sst [smem:[#allocation20_spill]] %s3146_s16 }
   0xd   :  { %3165 = sst [smem:[#allocation21_spill]] %s3147_s17 }
   0xe LB: > { %3166 = sst [smem:[#allocation2_spill]] %s2660_s24  ;;  %s36_s29 = sadd.s32 1, %s2668_s26  ;;  %s2676_s28 = sphi %s2785_s28, %s27_s28   ;;  %s2672_s27 = sphi %s2783_s27, %s3206_s27   ;;  %s2668_s26 = sphi %s2781_s26, %s3205_s26   ;;  %s2664_s25 = sphi %s2779_s25, %s3204_s25   ;;  %s2660_s24 = sphi %s2777_s24, %s3203_s24  }
   0xf   : > { %3167 = sst [smem:[#allocation3_spill]] %s2668_s26  ;;  %s39_s0 = sadd.s32 1, %s2672_s27 }
  0x10   : > { %3168 = sst [smem:[#allocation4_spill]] %s2672_s27  ;;  %p37_p0 = scmp.ge.s32.totalorder %s36_s29, 2 }
  0x11   : > { %3169 = sst [smem:[#allocation5_spill]] %s2676_s28  ;;  %p2242_p1 = scmp.ge.s32.totalorder %s2676_s28, 1 }
  0x12   : > { %p639_p2 = scmp.lt.s32.totalorder %s2676_s28, 5  ;;  %s3208_s29 = smov (%p37_p0, %s36_s29), 0 }
  0x13   : > { %3170 = sst [smem:[#allocation6_spill]] %s3208_s29  ;;  %s3210_s0 = smov (!%p37_p0, %s39_s0), %s2672_s27 }
  0x14   : > { %p640_p3 = pnand %p2242_p1, %p639_p2  ;;  %p41_p4 = scmp.ge.s32.totalorder %s3210_s0, 2 }
  0x16   : > { %s3212_s0 = smov (%p41_p4, %s3210_s0), 0  ;;  %643 = sbr.rel (%p640_p3) target bundleno = 2574 (0xa0e), region = 88 }
  0x17   : > { %3171 = sst [smem:[#allocation7_spill]] %s3212_s0 }
  0x1b   : > { %p751_p5 = scmp.lt.s32.totalorder %s2664_s25, 1  ;;  %p756_p6 = scmp.lt.s32.totalorder %s2660_s24, 1 }
  0x1c   : > { %s3172_s20 = sld [smem:[#allocation9_spill]] }
  0x1d   : > { %s3214_s25 = smov (!%p751_p5, %s2664_s25), 1  ;;  %s3174_s3 = sld [smem:[#allocation11_spill]] }
  0x1e   : > { %s2811_s30 = scalar_select %p756_p6, %s2660_s24, 1 }
  0x1f   : > { %s2303_s18 = sshll.u32 %s3214_s25, 4  ;;  %s3175_s5 = sld [smem:[#allocation12_spill]] }
  0x20   : > { %s2304_s24 = sshll.u32 %s2811_s30, 4  ;;  %s3177_s7 = sld [smem:[#allocation14_spill]] }
  0x21   : > { %s3178_s9 = sld [smem:[#allocation15_spill]]  ;;  %s2872_s17 = scalar_lea.vmem %s3143_s13, %s2304_s24 }
  0x22   : > { %s755_s21 = scalar_lea.vmem %s3172_s20, %s2303_s18  ;;  %s3184_s26 = sld [smem:[#allocation19_spill]] }
  0x23   : > { %s2828_s25 = scalar_lea.vmem %s3174_s3, %s2304_s24  ;;  %s3182_s3 = sld [smem:[#allocation18_spill]] }
  0x25   : > { %s2837_s22 = scalar_lea.vmem %s3175_s5, %s2304_s24  ;;  %s3183_s5 = sld [smem:[#allocation20_spill]] }
  0x26   : > { %s2846_s29 = scalar_lea.vmem %s3177_s7, %s2304_s24  ;;  %s3185_s7 = sld [smem:[#allocation21_spill]] }
  0x27   : > { %s2855_s1 = scalar_lea.vmem %s3178_s9, %s2304_s24  ;;  %s3186_s24 = sld [smem:[#allocation2_spill]] }
  0x28   : > { %3179 = sst [smem:[#allocation8_spill]] %s2855_s1  ;;  %s2309_s1 = sshll.u32 %s2811_s30, 6 }
  0x29   : > { %s807_s9 = scalar_lea.vmem %s3182_s3, %s2811_s30  ;;  %s2886_s11 = scalar_lea.vmem %s3184_s26, %s2309_s1 }
  0x2b   : > { %s815_s10 = scalar_lea.vmem %s3183_s5, %s2811_s30 }
  0x2c   : > { %s2891_s6 = scalar_lea.vmem %s3185_s7, %s2303_s18 }
  0x2d   : > { %p2259_p7 = scmp.ne.s32.totalorder %s3186_s24, 0 }
  0x2f   : > { %825 = sbr.rel (%p2259_p7) target bundleno = 55 (0x37), region = 92 }
  0x34   : > { %v826_v0 = vld [vmem:[%s755_s21] sm:$0xff]  ;;  %vm828_vm0 = vcmask 261120   ;;  %v827_v1 = vld [vmem:[%s755_s21 + $0x8] sm:$0x1]  ;;  %vm830_vm1 = vcmask 253952  }
  0x35   : > { %829 = vst.msk [vmem:[%s2891_s6] sm:$0xff] %vm828_vm0, %v826_v0 }
  0x36   : > { %831 = vst.msk [vmem:[%s2891_s6 + $0x8] sm:$0x1] %vm830_vm1, %v827_v1 }
  0x37 PF: > { %vm880_vm2 = vcmask 261120   ;;  %vm884_vm3 = vcmask 253952   ;;  %v2568_v16 = vld [vmem:[%s2828_s25 + $0x8] sm:$0xff]   ;;  %v2678_v17 = vmov 0.0   ;;  %vm2679_vm4 = vmmov 0   ;;  %v2569_v18 = vld [vmem:[%s2828_s25] sm:$0xff]   ;;  %s3189_s1 = scalar_lea.vmem %s3132_s2, %s2811_s30  ;;  %s3190_s15 = scalar_lea.vmem %s3134_s4, %s2811_s30 }
  0x38   : > { %2351 = vmatprep.subr.bf16.mxu0 %v2678_v17  ;;  %2355 = vmatprep.mubr.msk.bf16.mxu0 %vm2679_vm4, %v2678_v17  ;;  %s3187_s7 = sld [smem:[#allocation10_spill]]  ;;  %v2261_v41 = vld [vmem:[%s3189_s1] ss:$0 sm:$0xff]  ;;  %v2570_v45 = vld [vmem:[%s2837_s22 + $0x8] sm:$0xff]   ;;  %vm1193_vm9 = vcmask 64512   ;;  %s2681_s0 = smov 112  }
  0x39   : > { %2352 = vmatpush3.bf16.msra.mxu0 %v2568_v16  ;;  %2375 = vmatprep.subr.bf16.mxu1 %v2678_v17  ;;  %v2571_v47 = vld [vmem:[%s2837_s22] sm:$0xff]   ;;  %v2572_v48 = vld [vmem:[%s2846_s29 + $0x8] sm:$0xff]   ;;  %s3191_s14 = sld [smem:[#allocation13_spill]]  ;;  %s3193_s27 = scalar_lea.vmem %s3138_s8, %s2811_s30  ;;  %vm1487_vm10 = vcmask 1043456   ;;  %vm1488_vm11 = vcmask 1044480   ;;  %vm1390_vm12 = vcmask 72704  }
  0x3a   : > { %2353 = vmatprep.subr.bf16.mxu0 %v2678_v17  ;;  %2377 = vmatprep.mubr.msk.bf16.mxu1 %vm2679_vm4, %v2678_v17  ;;  %v2573_v49 = vld [vmem:[%s2846_s29] sm:$0xff]   ;;  %s2680_s29 = smov 120   ;;  %s2682_s24 = smov 104   ;;  %vm1394_vm13 = vcmask 65536   ;;  %vm1702_vm14 = vcmask 130048   ;;  %vm1705_vm15 = vcmask 195584  }
  0x3b   : > { %v2262_v51 = vld [vmem:[%s3190_s15] ss:$0 sm:$0xff]  ;;  %s3194_s3 = sld [smem:[#allocation8_spill]]  ;;  %s2684_s5 = smov 8  }
  0x3c   : > { %v2897_v2 = vld [vmem:[%s2891_s6] sm:$0xff]  ;;  %s3195_s1 = sld [smem:[#allocation16_spill]] }
  0x3d   : > { %v2900_v3 = vld [vmem:[%s2891_s6 + $0x8] sm:$0x1]  ;;  %v881_v4 = vsel %vm880_vm2, %v2897_v2, 0.0  ;;  %2354 = vmatpush3.bf16.msra.mxu0 %v2569_v18  ;;  %s3197_s15 = sld [smem:[#allocation17_spill]] }
  0x3e   : > { %v885_v5 = vsel %vm884_vm3, %v2900_v3, 0.0  ;;  %882 = vadd.xlane.f32.xlu0 %v881_v4  ;;  %2359 = vmatprep.subr.bf16.mxu0 %v2678_v17  ;;  %s3188_s18 = scalar_lea.vmem %s3187_s7, %s2811_s30  ;;  %s2685_s7 = smov 16  }
  0x3f   : > { %v2260_v35 = vld [vmem:[%s3188_s18] ss:$0 sm:$0xff]  ;;  %s3192_s20 = scalar_lea.vmem %s3191_s14, %s2811_s30  ;;  %s2686_s18 = smov 24  }
  0x40   : > { %v2266_v59 = vld [vmem:[%s3192_s20] ss:$0 sm:$0xff]  ;;  %s3199_s14 = scalar_lea.vmem %s3142_s12, %s2811_s30 }
  0x42   : > { %886 = vadd.xlane.f32.xlu0 %v885_v5  ;;  %s3196_s22 = scalar_lea.vmem %s3195_s1, %s2811_s30 }
  0xc7   : > { %v883_v6 = vpop.xlane.xlu0 %882 }
  0xc8   : > { %v889_v7 = vmul.f32 0.03125, %v883_v6 }
  0xca   : > { %v891_v8 = vsub.f32 %v2897_v2, %v889_v7  ;;  %v2270_v7 = vld [vmem:[%s3193_s27] ss:$0 sm:$0xff] }
  0xcb   : > { %v887_v9 = vpop.xlane.xlu0 %886 }
  0xcc   : > { %v890_v10 = vmul.f32 0.03125, %v887_v9  ;;  %v893_v11 = vmul.f32 %v891_v8, %v891_v8  ;;  %v928_v37 = vmul.f32 %v2260_v35, %v891_v8 }
  0xce   : > { %v892_v12 = vsub.f32 %v2900_v3, %v890_v10  ;;  %v895_v13 = vsel %vm880_vm2, %v893_v11, 0.0 }
  0xcf   : > { %896 = vadd.xlane.f32.xlu1 %v895_v13 }
  0xd0   : > { %v894_v14 = vmul.f32 %v892_v12, %v892_v12  ;;  %v929_v38 = vmul.f32 %v2260_v35, %v892_v12 }
  0xd2   : > { %v898_v15 = vsel %vm884_vm3, %v894_v14, 0.0 }
  0xd3   : > { %899 = vadd.xlane.f32.xlu1 %v898_v15 }
 0x158   : > { %v897_v19 = vpop.xlane.xlu1 %896 }
 0x159   : > { %v902_v20 = vmul.f32 0.032258064, %v897_v19 }
 0x15b   : > { %2586 = vrsqrt.f32 %v902_v20  ;;  %vm906_vm5 = vcmp.eq.f32.partialorder %v902_v20, inf  ;;  %v909_v25 = vand.u32 2147483648, %v902_v20  ;;  %vm908_vm6 = vcmp.eq.f32.partialorder %v902_v20, 0.0 }
 0x15c   : > { %v900_v21 = vpop.xlane.xlu1 %899 }
 0x15d   : > { %v903_v22 = vmul.f32 0.032258064, %v900_v21 }
 0x15f   : > { %2588 = vrsqrt.f32 %v903_v22  ;;  %vm913_vm7 = vcmp.eq.f32.partialorder %v903_v22, inf  ;;  %v916_v31 = vand.u32 2147483648, %v903_v22  ;;  %vm915_vm8 = vcmp.eq.f32.partialorder %v903_v22, 0.0 }
 0x168   : > { %v2587_v23 = vpop.eup %2586 }
 0x169   : > { %v905_v24 = vmul.f32 %v2587_v23, %v902_v20 }
 0x16b   : > { %v907_v26 = vsel %vm906_vm5, %v902_v20, %v905_v24 }
 0x16c   : > { %v2589_v27 = vpop.eup %2588  ;;  %v910_v28 = vsel %vm908_vm6, %v909_v25, %v907_v26 }
 0x16d   : > { %v918_v29 = vadd.f32 1e-06, %v910_v28  ;;  %v912_v30 = vmul.f32 %v2589_v27, %v903_v22 }
 0x16f   : > { %2590 = vrcp.f32 %v918_v29  ;;  %v914_v32 = vsel %vm913_vm7, %v903_v22, %v912_v30 }
 0x170   : > { %v917_v33 = vsel %vm915_vm8, %v916_v31, %v914_v32  ;;  %v2683_v32 = vmov 65535  }
 0x171   : > { %v919_v34 = vadd.f32 1e-06, %v917_v33  ;;  %v1489_v33 = vsel %vm1487_vm10, 4294967295, %v2683_v32 }
 0x173   : > { %2592 = vrcp.f32 %v919_v34 }
 0x17c   : > { %v2591_v36 = vpop.eup %2590 }
 0x17d   : > { %v930_v39 = vmul.f32 %v2591_v36, %v928_v37 }
 0x17f   : > { %v938_v43 = vadd.f32 %v2261_v41, %v930_v39  ;;  %v2979_v39 = vsel %vm1488_vm11, %v1489_v33, 0 }
 0x180   : > { %v2593_v40 = vpop.eup %2592 }
 0x181   : > { %v931_v42 = vmul.f32 %v2593_v40, %v929_v38 }
 0x183   : > { %v939_v44 = vadd.f32 %v2261_v41, %v931_v42 }
 0x185   : > { %v940_v46 = vpack.c.bf16 %v939_v44, %v938_v43 }
 0x187   : > { %2356 = vmatmul.mubr.msk.bf16.vlgmr.msra.gmra.mxu0 %vm880_vm2, %v940_v46 }
 0x188   : > { %2360 = vmatpush3.bf16.msra.mxu0 %v2570_v45  ;;  %2363 = vmatprep.mubr.msk.bf16.mxu0 %vm2679_vm4, %v2678_v17 }
 0x189   : > { %2361 = vmatprep.subr.bf16.mxu0 %v2678_v17 }
 0x18c   : > { %2362 = vmatpush3.bf16.msra.mxu0 %v2571_v47 }
 0x18d   : > { %2367 = vmatprep.subr.bf16.mxu0 %v2678_v17 }
 0x18f   : > { %2364 = vmatmul.mubr.msk.bf16.vlgmr.msra.gmra.mxu0 %vm880_vm2, %v940_v46 }
 0x190   : > { %2368 = vmatpush3.bf16.msra.mxu0 %v2572_v48  ;;  %2371 = vmatprep.mubr.msk.bf16.mxu0 %vm2679_vm4, %v2678_v17 }
 0x191   : > { %2369 = vmatprep.subr.bf16.mxu0 %v2678_v17 }
 0x194   : > { %2370 = vmatpush3.bf16.msra.mxu0 %v2573_v49 }
 0x195   : > { %2381 = vmatprep.subr.bf16.mxu0 %v2678_v17 }
 0x197   : > { %2372 = vmatmul.mubr.msk.bf16.vlgmr.msra.gmra.mxu0 %vm880_vm2, %v940_v46 }
 0x198   : > { %2383 = vmatprep.mubr.msk.bf16.mxu0 %vm2679_vm4, %v2678_v17 }
 0x247   : > { %v996_v50 = vpop.f32.mrf.mxu0 }
 0x248   : > { %v997_v54 = vadd.f32 %v2262_v51, %v996_v50 }
 0x249   : > { %v2357_v52 = vpop.f32.mrf.mxu0 }
 0x24b   : > { %v999_v53 = vpop.f32.mrf.mxu0 }
 0x24c   : > { %v1000_v55 = vadd.f32 %v2262_v51, %v999_v53 }
 0x24d   : > { %v2358_v56 = vpop.f32.mrf.mxu0 }
 0x24e   : > { %v2513_v57 = vpack.i.bf16 %v1000_v55, %v997_v54  ;;  %v1141_v13 = vpack.c.bf16 %v1000_v55, %v997_v54 }
 0x24f   : > { %v1055_v58 = vpop.f32.mrf.mxu0 }
 0x250   : > { %2514 = vrot.lane.b32.xlu1 %v2513_v57, %s2680_s29  ;;  %v1056_v62 = vadd.f32 %v2266_v59, %v1055_v58 }
 0x251   : > { %v2365_v60 = vpop.f32.mrf.mxu0 }
 0x253   : > { %v1058_v61 = vpop.f32.mrf.mxu0 }
 0x254   : > { %v1059_v63 = vadd.f32 %v2266_v59, %v1058_v61 }
 0x255   : > { %v2366_v0 = vpop.f32.mrf.mxu0 }
 0x256   : > { %v2518_v1 = vpack.i.bf16 %v1059_v63, %v1056_v62  ;;  %v1165_v4 = vpack.c.bf16 %v1059_v63, %v1056_v62 }
 0x257   : > { %v1114_v5 = vpop.f32.mrf.mxu0 }
 0x258   : > { %2519 = vrot.lane.b32.xlu1 %v2518_v1, %s2681_s0  ;;  %2509 = vrot.lane.b32.xlu0 %v2518_v1, %s2680_s29  ;;  %v1198_v6 = vsel %vm1193_vm9, %v1165_v4, 0  ;;  %v1115_v10 = vadd.f32 %v2270_v7, %v1114_v5 }
 0x259   : > { %v2373_v8 = vpop.f32.mrf.mxu0  ;;  %2376 = vmatpush3.bf16.xpose.msra.mxu1 %v1198_v6 }
 0x25a   : > { %2387 = vmatprep.subr.bf16.mxu1 %v2678_v17 }
 0x25b   : > { %v1117_v9 = vpop.f32.mrf.mxu0 }
 0x25c   : > { %v1118_v11 = vadd.f32 %v2270_v7, %v1117_v9  ;;  %2524 = vrot.lane.b32.xlu1 %v2518_v1, %s2682_s24  ;;  %2529 = vrot.lane.b32.xlu0 %v2513_v57, %s2681_s0 }
 0x25d   : > { %v2374_v12 = vpop.f32.mrf.mxu0 }
 0x25e   : > { %v1189_v14 = vpack.c.bf16 %v1118_v11, %v1115_v10  ;;  %v2969_v15 = vpack.i.bf16 %v1118_v11, %v1115_v10 }
 0x260   : > { %2534 = vrot.lane.b32.xlu1 %v2513_v57, %s2682_s24  ;;  %2378 = vmatmul.mubr.msk.bf16.vlgmr.msra.gmra.mxu1 %vm1193_vm9, %v1141_v13  ;;  %v1492_v43 = vand.u32 %v2979_v39, %v1189_v14 }
 0x261   : > { %2389 = vmatprep.mubr.msk.bf16.mxu1 %vm2679_vm4, %v2678_v17 }
 0x2c2   : > { %v2515_v16 = vpop.permute.xlu1 %2514 }
 0x2c3   : > { %v2517_v34 = vunpack.i.h.bf16 %v2515_v16  ;;  %v2516_v35 = vunpack.i.l.bf16 %v2515_v16 }
 0x2c5   : > { %v1142_v40 = vpack.c.bf16 %v2517_v34, %v2516_v35 }
 0x2ca   : > { %v2520_v18 = vpop.permute.xlu1 %2519  ;;  %v2510_v19 = vpop.permute.xlu0 %2509 }
 0x2cb   : > { %v2522_v20 = vunpack.i.h.bf16 %v2520_v18  ;;  %v2521_v21 = vunpack.i.l.bf16 %v2520_v18  ;;  %v2512_v22 = vunpack.i.h.bf16 %v2510_v19  ;;  %v2511_v23 = vunpack.i.l.bf16 %v2510_v19 }
 0x2cd   : > { %v1167_v24 = vpack.c.bf16 %v2522_v20, %v2521_v21  ;;  %v1166_v25 = vpack.c.bf16 %v2512_v22, %v2511_v23 }
 0x2ce   : > { %v2525_v26 = vpop.permute.xlu1 %2524  ;;  %v2530_v27 = vpop.permute.xlu0 %2529 }
 0x2cf   : > { %v2527_v28 = vunpack.i.h.bf16 %v2525_v26  ;;  %v2526_v29 = vunpack.i.l.bf16 %v2525_v26  ;;  %v1245_v30 = vsel %vm1193_vm9, %v1166_v25, 0  ;;  %v1292_v31 = vsel %vm1193_vm9, %v1167_v24, 0 }
 0x2d0   : > { %2382 = vmatpush3.bf16.xpose.msra.mxu0 %v1245_v30  ;;  %2388 = vmatpush3.bf16.xpose.msra.mxu1 %v1292_v31  ;;  %v2532_v36 = vunpack.i.h.bf16 %v2530_v27  ;;  %v2531_v37 = vunpack.i.l.bf16 %v2530_v27 }
 0x2d1   : > { %2393 = vmatprep.subr.bf16.mxu0 %v2678_v17  ;;  %2399 = vmatprep.subr.bf16.mxu1 %v2678_v17  ;;  %v1168_v38 = vpack.c.bf16 %v2527_v28, %v2526_v29 }
 0x2d2   : > { %v1143_v41 = vpack.c.bf16 %v2532_v36, %v2531_v37  ;;  %v2535_v42 = vpop.permute.xlu1 %2534 }
 0x2d3   : > { %v1339_v44 = vsel %vm1193_vm9, %v1168_v38, 0  ;;  %v2537_v45 = vunpack.i.h.bf16 %v2535_v42  ;;  %v2536_v46 = vunpack.i.l.bf16 %v2535_v42 }
 0x2d5   : > { %v1144_v47 = vpack.c.bf16 %v2537_v45, %v2536_v46 }
 0x2d7   : > { %2384 = vmatmul.mubr.msk.bf16.vlgmr.msra.gmra.mxu0 %vm1193_vm9, %v1142_v40  ;;  %2390 = vmatmul.mubr.msk.bf16.vlgmr.msra.gmra.mxu1 %vm1193_vm9, %v1143_v41 }
 0x2d8   : > { %2394 = vmatpush3.bf16.xpose.msra.mxu0 %v1339_v44  ;;  %2400 = vmatpush3.bf16.msra.mxu1 %v1492_v43 }
 0x2d9   : > { %2395 = vmatprep.mubr.msk.bf16.mxu0 %vm2679_vm4, %v2678_v17  ;;  %2401 = vmatprep.mubr.msk.bf16.mxu1 %vm2679_vm4, %v2678_v17 }
 0x2da   : > { %2411 = vmatprep.subr.bf16.mxu1 %v2678_v17  ;;  %2405 = vmatprep.subr.bf16.mxu0 %v2678_v17 }
 0x2df   : > { %2396 = vmatmul.mubr.msk.bf16.vlgmr.msra.gmra.mxu0 %vm1193_vm9, %v1144_v47 }
 0x2e0   : > { %2407 = vmatprep.mubr.msk.bf16.mxu0 %vm2679_vm4, %v2678_v17 }
 0x320   : > { %v1234_v48 = vpop.f32.mrf.mxu1 }
 0x321   : > { %v1382_v49 = vmul.f32 0.35355338, %v1234_v48 }
 0x322   : > { %v2379_v50 = vpop.f32.mrf.mxu1 }
 0x323   : > { %v1391_v51 = vsel %vm1390_vm12, %v1382_v49, -inf }
 0x324   : > { %1392 = vmax.xlane.f32.xlu0 %v1391_v51  ;;  %v1237_v52 = vpop.f32.mrf.mxu1 }
 0x325   : > { %v1383_v53 = vmul.f32 0.35355338, %v1237_v52 }
 0x326   : > { %v2380_v54 = vpop.f32.mrf.mxu1 }
 0x327   : > { %v1395_v55 = vsel %vm1394_vm13, %v1383_v53, -inf }
 0x328   : > { %1396 = vmax.xlane.f32.xlu1 %v1395_v55 }
 0x397   : > { %v1281_v56 = vpop.f32.mrf.mxu0  ;;  %v1328_v57 = vpop.f32.mrf.mxu1 }
 0x398   : > { %v1384_v58 = vmul.f32 0.35355338, %v1281_v56  ;;  %v1386_v6 = vmul.f32 0.35355338, %v1328_v57 }
 0x399   : > { %v2385_v59 = vpop.f32.mrf.mxu0  ;;  %v2391_v60 = vpop.f32.mrf.mxu1 }
 0x39a   : > { %v1398_v61 = vsel %vm1390_vm12, %v1384_v58, -inf  ;;  %v1404_v12 = vsel %vm1390_vm12, %v1386_v6, -inf }
 0x39b   : > { %v1331_v62 = vpop.f32.mrf.mxu1  ;;  %1399 = vmax.xlane.f32.xlu0 %v1398_v61  ;;  %v1284_v63 = vpop.f32.mrf.mxu0 }
 0x39c   : > { %v1387_v0 = vmul.f32 0.35355338, %v1331_v62  ;;  %v1385_v1 = vmul.f32 0.35355338, %v1284_v63 }
 0x39d   : > { %v2386_v4 = vpop.f32.mrf.mxu0  ;;  %v2392_v5 = vpop.f32.mrf.mxu1 }
 0x39e   : > { %v1407_v7 = vsel %vm1394_vm13, %v1387_v0, -inf  ;;  %v1401_v8 = vsel %vm1394_vm13, %v1385_v1, -inf }
 0x39f   : > { %1408 = vmax.xlane.f32.xlu1 %v1407_v7  ;;  %1402 = vmax.xlane.f32.xlu0 %v1401_v8  ;;  %v1375_v9 = vpop.f32.mrf.mxu0 }
 0x3a0   : > { %v1388_v11 = vmul.f32 0.35355338, %v1375_v9 }
 0x3a1   : > { %v2397_v10 = vpop.f32.mrf.mxu0 }
 0x3a2   : > { %v1410_v18 = vsel %vm1390_vm12, %v1388_v11, -inf }
 0x3a3   : > { %1405 = vmax.xlane.f32.xlu0 %v1404_v12  ;;  %v1378_v13 = vpop.f32.mrf.mxu0 }
 0x3a4   : > { %v3000_v14 = vmul.f32 0.35355338, %v1378_v13 }
 0x3a5   : > { %v2398_v16 = vpop.f32.mrf.mxu0 }
 0x3a6   : > { %v1413_v19 = vsel %vm1394_vm13, %v3000_v14, -inf }
 0x3a7   : > { %1411 = vmax.xlane.f32.xlu0 %v1410_v18  ;;  %1414 = vmax.xlane.f32.xlu1 %v1413_v19 }
 0x3ad   : > { %v1393_v20 = vpop.xlane.xlu0 %1392 }
 0x3ae   : > { %v1416_v21 = vsub.f32 %v1382_v49, %v1393_v20 }
 0x3b0   : > { %v1424_v22 = vmul.f32 1.442695, %v1416_v21 }
 0x3b1   : > { %v1397_v23 = vpop.xlane.xlu1 %1396 }
 0x3b2   : > { %2594 = vpow2.f32 %v1424_v22  ;;  %v1417_v24 = vsub.f32 %v1383_v53, %v1397_v23 }
 0x3b4   : > { %v1426_v25 = vmul.f32 1.442695, %v1417_v24 }
 0x3b6   : > { %2596 = vpow2.f32 %v1426_v25 }
 0x3bf   : > { %v2595_v26 = vpop.eup %2594 }
 0x3c0   : > { %v1440_v27 = vsel %vm1390_vm12, %v2595_v26, 0.0 }
 0x3c1   : > { %1441 = vadd.xlane.f32.xlu0 %v1440_v27 }
 0x3c3   : > { %v2597_v28 = vpop.eup %2596 }
 0x3c4   : > { %v1443_v29 = vsel %vm1394_vm13, %v2597_v28, 0.0 }
 0x3c5   : > { %1444 = vadd.xlane.f32.xlu1 %v1443_v29 }
 0x424   : > { %v1400_v30 = vpop.xlane.xlu0 %1399 }
 0x425   : > { %v1418_v31 = vsub.f32 %v1384_v58, %v1400_v30 }
 0x427   : > { %v1428_v32 = vmul.f32 1.442695, %v1418_v31 }
 0x428   : > { %v1409_v33 = vpop.xlane.xlu1 %1408  ;;  %v1403_v34 = vpop.xlane.xlu0 %1402 }
 0x429   : > { %2598 = vpow2.f32 %v1428_v32  ;;  %v1421_v35 = vsub.f32 %v1387_v0, %v1409_v33  ;;  %v1419_v36 = vsub.f32 %v1385_v1, %v1403_v34 }
 0x42b   : > { %v1430_v37 = vmul.f32 1.442695, %v1419_v36  ;;  %v1434_v38 = vmul.f32 1.442695, %v1421_v35 }
 0x42c   : > { %v1406_v40 = vpop.xlane.xlu0 %1405 }
 0x42d   : > { %v1420_v41 = vsub.f32 %v1386_v6, %v1406_v40  ;;  %2600 = vpow2.f32 %v1430_v37 }
 0x42e   : > { %2602 = vpow2.f32 %v1434_v38 }
 0x42f   : > { %v1432_v42 = vmul.f32 1.442695, %v1420_v41 }
 0x430   : > { %v1412_v43 = vpop.xlane.xlu0 %1411  ;;  %v1415_v56 = vpop.xlane.xlu1 %1414 }
 0x431   : > { %2604 = vpow2.f32 %v1432_v42  ;;  %v1422_v44 = vsub.f32 %v1388_v11, %v1412_v43  ;;  %v1423_v63 = vsub.f32 %v3000_v14, %v1415_v56 }
 0x433   : > { %v1436_v45 = vmul.f32 1.442695, %v1422_v44  ;;  %v1438_v1 = vmul.f32 1.442695, %v1423_v63 }
 0x435   : > { %2606 = vpow2.f32 %v1436_v45 }
 0x436   : > { %v2599_v46 = vpop.eup %2598 }
 0x437   : > { %v1446_v47 = vsel %vm1390_vm12, %v2599_v46, 0.0 }
 0x438   : > { %1447 = vadd.xlane.f32.xlu0 %v1446_v47 }
 0x43a   : > { %v2601_v48 = vpop.eup %2600 }
 0x43b   : > { %v1449_v49 = vsel %vm1394_vm13, %v2601_v48, 0.0  ;;  %v2603_v50 = vpop.eup %2602 }
 0x43c   : > { %1450 = vadd.xlane.f32.xlu1 %v1449_v49  ;;  %v1455_v53 = vsel %vm1394_vm13, %v2603_v50, 0.0 }
 0x43e   : > { %v2605_v51 = vpop.eup %2604 }
 0x43f   : > { %v1452_v52 = vsel %vm1390_vm12, %v2605_v51, 0.0 }
 0x440   : > { %1453 = vadd.xlane.f32.xlu0 %v1452_v52  ;;  %1456 = vadd.xlane.f32.xlu1 %v1455_v53 }
 0x442   : > { %v3011_v54 = vpop.eup %2606 }
 0x443   : > { %v1458_v55 = vsel %vm1390_vm12, %v3011_v54, 0.0 }
 0x444   : > { %1459 = vadd.xlane.f32.xlu0 %v1458_v55 }
 0x44a   : > { %v1442_v57 = vpop.xlane.xlu0 %1441 }
 0x44b   : > { %2608 = vrcp.f32 %v1442_v57 }
 0x44e   : > { %v1445_v58 = vpop.xlane.xlu1 %1444 }
 0x44f   : > { %2610 = vrcp.f32 %v1445_v58  ;;  %v2575_v58 = vld [vmem:[%s3194_s3] sm:$0xff]  }
 0x450   : > { %2612 = vpow2.f32 %v1438_v1 }
 0x451   : > { %2544 = vrot.lane.b32.xlu1 %v2969_v15, %s2681_s0 }
 0x458   : > { %v2609_v59 = vpop.eup %2608 }
 0x459   : > { %v1472_v61 = vmul.f32 %v2609_v59, %v2595_v26 }
 0x45a   : > { %2539 = vrot.lane.b32.xlu0 %v2969_v15, %s2680_s29  ;;  %s3198_s29 = scalar_lea.vmem %s3197_s15, %s2811_s30 }
 0x45c   : > { %v2611_v60 = vpop.eup %2610 }
 0x45d   : > { %v1473_v62 = vmul.f32 %v2611_v60, %v2597_v28  ;;  %v2613_v4 = vpop.eup %2612 }
 0x45e   : > { %v1461_v5 = vsel %vm1394_vm13, %v2613_v4, 0.0 }
 0x45f   : > { %v1480_v0 = vpack.c.bf16 %v1473_v62, %v1472_v61 }
 0x461   : > { %2402 = vmatmul.mubr.msk.bf16.vlgmr.msra.gmra.mxu1 %vm1390_vm12, %v1480_v0 }
 0x462   : > { %2413 = vmatprep.mubr.msk.bf16.mxu1 %vm2679_vm4, %v2678_v17 }
 0x475   : > { %1462 = vadd.xlane.f32.xlu1 %v1461_v5 }
 0x486   : > { %2549 = vrot.lane.b32.xlu1 %v2969_v15, %s2682_s24 }
 0x4c1   : > { %v1448_v6 = vpop.xlane.xlu0 %1447 }
 0x4c2   : > { %2614 = vrcp.f32 %v1448_v6 }
 0x4c5   : > { %v1451_v7 = vpop.xlane.xlu1 %1450 }
 0x4c6   : > { %2616 = vrcp.f32 %v1451_v7 }
 0x4c9   : > { %v1454_v8 = vpop.xlane.xlu0 %1453  ;;  %v1457_v9 = vpop.xlane.xlu1 %1456 }
 0x4ca   : > { %2618 = vrcp.f32 %v1454_v8 }
 0x4cb   : > { %2620 = vrcp.f32 %v1457_v9 }
 0x4cd   : > { %v1460_v10 = vpop.xlane.xlu0 %1459  ;;  %v2545_v11 = vpop.permute.xlu1 %2544 }
 0x4ce   : > { %v2547_v12 = vunpack.i.h.bf16 %v2545_v11  ;;  %v2546_v13 = vunpack.i.l.bf16 %v2545_v11  ;;  %2622 = vrcp.f32 %v1460_v10 }
 0x4cf   : > { %v2615_v20 = vpop.eup %2614 }
 0x4d0   : > { %v1191_v14 = vpack.c.bf16 %v2547_v12, %v2546_v13  ;;  %v1474_v26 = vmul.f32 %v2615_v20, %v2599_v46  ;;  %v2282_v20 = vld [vmem:[%s3196_s22] ss:$0 sm:$0xff] }
 0x4d1   : > { %v2540_v16 = vpop.permute.xlu0 %2539 }
 0x4d2   : > { %v2542_v18 = vunpack.i.h.bf16 %v2540_v16  ;;  %v2541_v19 = vunpack.i.l.bf16 %v2540_v16  ;;  %v1586_v21 = vand.u32 %v2979_v39, %v1191_v14 }
 0x4d3   : > { %v2617_v15 = vpop.eup %2616 }
 0x4d4   : > { %v1190_v22 = vpack.c.bf16 %v2542_v18, %v2541_v19  ;;  %2412 = vmatpush3.bf16.msra.mxu1 %v1586_v21  ;;  %v1475_v23 = vmul.f32 %v2617_v15, %v2601_v48  ;;  %v2574_v48 = vld [vmem:[%s3194_s3 + $0x8] sm:$0xff]  }
 0x4d5   : > { %2423 = vmatprep.subr.bf16.mxu1 %v2678_v17 }
 0x4d6   : > { %v1539_v24 = vand.u32 %v2979_v39, %v1190_v22  ;;  %v1481_v29 = vpack.c.bf16 %v1475_v23, %v1474_v26 }
 0x4d7   : > { %v2619_v25 = vpop.eup %2618 }
 0x4d8   : > { %v2621_v27 = vpop.eup %2620  ;;  %2406 = vmatpush3.bf16.msra.mxu0 %v1539_v24  ;;  %v1476_v28 = vmul.f32 %v2619_v25, %v2605_v51 }
 0x4d9   : > { %v1477_v30 = vmul.f32 %v2621_v27, %v2603_v50  ;;  %2417 = vmatprep.subr.bf16.mxu0 %v2678_v17 }
 0x4db   : > { %2408 = vmatmul.mubr.msk.bf16.vlgmr.msra.gmra.mxu0 %vm1390_vm12, %v1481_v29  ;;  %v1482_v31 = vpack.c.bf16 %v1477_v30, %v1476_v28  ;;  %v2623_v38 = vpop.eup %2622 }
 0x4dc   : > { %2419 = vmatprep.mubr.msk.bf16.mxu0 %vm2679_vm4, %v2678_v17  ;;  %v1478_v41 = vmul.f32 %v2623_v38, %v3011_v54  ;;  %v2576_v38 = vld [vmem:[%s2872_s17 + $0x8] sm:$0xff]  }
 0x4dd   : > { %2414 = vmatmul.mubr.msk.bf16.vlgmr.msra.gmra.mxu1 %vm1390_vm12, %v1482_v31 }
 0x4de   : > { %2427 = vmatprep.mubr.msk.bf16.mxu1 %vm2679_vm4, %v2678_v17  ;;  %2424 = vmatpush3.bf16.msra.mxu1 %v2574_v48 }
 0x4df   : > { %2425 = vmatprep.subr.bf16.mxu1 %v2678_v17 }
 0x4e2   : > { %2426 = vmatpush3.bf16.msra.mxu1 %v2575_v58 }
 0x4e3   : > { %2439 = vmatprep.subr.bf16.mxu1 %v2678_v17 }
 0x4fe   : > { %v1463_v32 = vpop.xlane.xlu1 %1462 }
 0x4ff   : > { %2624 = vrcp.f32 %v1463_v32 }
 0x502   : > { %v2550_v33 = vpop.permute.xlu1 %2549 }
 0x503   : > { %v2552_v34 = vunpack.i.h.bf16 %v2550_v33  ;;  %v2551_v35 = vunpack.i.l.bf16 %v2550_v33 }
 0x505   : > { %v1192_v36 = vpack.c.bf16 %v2552_v34, %v2551_v35 }
 0x507   : > { %v1633_v37 = vand.u32 %v2979_v39, %v1192_v36 }
 0x509   : > { %2418 = vmatpush3.bf16.msra.mxu0 %v1633_v37 }
 0x50a   : > { %2431 = vmatprep.subr.bf16.mxu0 %v2678_v17 }
 0x50c   : > { %v2625_v40 = vpop.eup %2624 }
 0x50d   : > { %v1479_v42 = vmul.f32 %v2625_v40, %v2613_v4  ;;  %v2577_v40 = vld [vmem:[%s2872_s17] sm:$0xff]  }
 0x50f   : > { %v1483_v43 = vpack.c.bf16 %v1479_v42, %v1478_v41 }
 0x511   : > { %2420 = vmatmul.mubr.msk.bf16.vlgmr.msra.gmra.mxu0 %vm1390_vm12, %v1483_v43 }
 0x512   : > { %2435 = vmatprep.mubr.msk.bf16.mxu0 %vm2679_vm4, %v2678_v17  ;;  %2432 = vmatpush3.bf16.msra.mxu0 %v2576_v38 }
 0x513   : > { %2433 = vmatprep.subr.bf16.mxu0 %v2678_v17 }
 0x516   : > { %2434 = vmatpush3.bf16.msra.mxu0 %v2577_v40  ;;  %v2292_v40 = vld [vmem:[%s815_s10] ss:$0 sm:$0xff] }
 0x521   : > { %v1528_v44 = vpop.f32.mrf.mxu1 }
 0x523   : > { %v2403_v45 = vpop.f32.mrf.mxu1 }
 0x525   : > { %v1531_v46 = vpop.f32.mrf.mxu1 }
 0x527   : > { %v2404_v47 = vpop.f32.mrf.mxu1 }
 0x59b   : > { %v1575_v39 = vpop.f32.mrf.mxu0 }
 0x59d   : > { %v1622_v49 = vpop.f32.mrf.mxu1  ;;  %v2409_v50 = vpop.f32.mrf.mxu0 }
 0x59f   : > { %v2415_v51 = vpop.f32.mrf.mxu1  ;;  %v1578_v52 = vpop.f32.mrf.mxu0 }
 0x5a0   : > { %v2553_v53 = vpack.i.bf16 %v1578_v52, %v1575_v39 }
 0x5a1   : > { %v1625_v54 = vpop.f32.mrf.mxu1  ;;  %v2410_v55 = vpop.f32.mrf.mxu0 }
 0x5a2   : > { %v2558_v56 = vpack.i.bf16 %v1625_v54, %v1622_v49  ;;  %2554 = vrot.lane.b32.xlu1 %v2553_v53, %s2684_s5 }
 0x5a3   : > { %v2416_v57 = vpop.f32.mrf.mxu1 }
 0x5a4   : > { %2559 = vrot.lane.b32.xlu0 %v2558_v56, %s2685_s7  ;;  %v2286_v56 = vld [vmem:[%s3198_s29] ss:$0 sm:$0xff] }
 0x5d1   : > { %v1669_v59 = vpop.f32.mrf.mxu0 }
 0x5d3   : > { %v2421_v60 = vpop.f32.mrf.mxu0 }
 0x5d5   : > { %v1672_v61 = vpop.f32.mrf.mxu0 }
 0x5d6   : > { %v2563_v62 = vpack.i.bf16 %v1672_v61, %v1669_v59 }
 0x5d7   : > { %v2422_v63 = vpop.f32.mrf.mxu0 }
 0x5d8   : > { %2564 = vrot.lane.b32.xlu1 %v2563_v62, %s2686_s18  ;;  %v2287_v62 = vld [vmem:[%s3199_s14] ss:$0 sm:$0xff] }
 0x614   : > { %v2555_v0 = vpop.permute.xlu1 %2554 }
 0x615   : > { %v2557_v1 = vunpack.i.h.bf16 %v2555_v0  ;;  %v2556_v4 = vunpack.i.l.bf16 %v2555_v0 }
 0x616   : > { %v2560_v5 = vpop.permute.xlu0 %2559 }
 0x617   : > { %v2562_v6 = vunpack.i.h.bf16 %v2560_v5  ;;  %v2561_v7 = vunpack.i.l.bf16 %v2560_v5  ;;  %v1701_v8 = vsel %vm1193_vm9, %v1531_v46, %v2557_v1  ;;  %v1700_v9 = vsel %vm1193_vm9, %v1528_v44, %v2556_v4  ;;  %v2578_v5 = vld [vmem:[%s2886_s11 + $0x38] sm:$0xff]  }
 0x619   : > { %v1703_v13 = vsel %vm1702_vm14, %v1700_v9, %v2561_v7  ;;  %v1704_v14 = vsel %vm1702_vm14, %v1701_v8, %v2562_v6  ;;  %v2579_v6 = vld [vmem:[%s2886_s11 + $0x30] sm:$0xff]   ;;  %v2580_v7 = vld [vmem:[%s2886_s11 + $0x28] sm:$0xff]   ;;  %v2581_v8 = vld [vmem:[%s2886_s11 + $0x20] sm:$0xff]  }
 0x61a   : > { %v2582_v9 = vld [vmem:[%s2886_s11 + $0x18] sm:$0xff]  }
 0x64a   : > { %v2565_v10 = vpop.permute.xlu1 %2564 }
 0x64b   : > { %v2567_v11 = vunpack.i.h.bf16 %v2565_v10  ;;  %v2566_v12 = vunpack.i.l.bf16 %v2565_v10  ;;  %v2583_v10 = vld [vmem:[%s2886_s11 + $0x10] sm:$0xff]  }
 0x64d   : > { %v1707_v16 = vsel %vm1705_vm15, %v1704_v14, %v2567_v11  ;;  %v1706_v18 = vsel %vm1705_vm15, %v1703_v13, %v2566_v12  ;;  %v2584_v11 = vld [vmem:[%s2886_s11 + $0x8] sm:$0xff]   ;;  %v2585_v12 = vld [vmem:[%s2886_s11] sm:$0xff]  }
 0x64e   : > { %v1708_v19 = vpack.c.bf16 %v1707_v16, %v1706_v18  ;;  %v2288_v13 = vld [vmem:[%s807_s9] ss:$0 sm:$0xff] }
 0x650   : > { %2428 = vmatmul.mubr.msk.bf16.vlgmr.msra.gmra.mxu1 %vm880_vm2, %v1708_v19 }
 0x651   : > { %2455 = vmatprep.mubr.msk.bf16.mxu1 %vm2679_vm4, %v2678_v17  ;;  %2440 = vmatpush3.bf16.msra.mxu1 %v2578_v5 }
 0x652   : > { %2441 = vmatprep.subr.bf16.mxu1 %v2678_v17 }
 0x655   : > { %2442 = vmatpush3.bf16.msra.mxu1 %v2579_v6 }
 0x656   : > { %2443 = vmatprep.subr.bf16.mxu1 %v2678_v17 }
 0x659   : > { %2444 = vmatpush3.bf16.msra.mxu1 %v2580_v7 }
 0x65a   : > { %2445 = vmatprep.subr.bf16.mxu1 %v2678_v17 }
 0x65d   : > { %2446 = vmatpush3.bf16.msra.mxu1 %v2581_v8 }
 0x65e   : > { %2447 = vmatprep.subr.bf16.mxu1 %v2678_v17 }
 0x661   : > { %2448 = vmatpush3.bf16.msra.mxu1 %v2582_v9 }
 0x662   : > { %2449 = vmatprep.subr.bf16.mxu1 %v2678_v17 }
 0x665   : > { %2450 = vmatpush3.bf16.msra.mxu1 %v2583_v10 }
 0x666   : > { %2451 = vmatprep.subr.bf16.mxu1 %v2678_v17 }
 0x669   : > { %2452 = vmatpush3.bf16.msra.mxu1 %v2584_v11 }
 0x66a   : > { %2453 = vmatprep.subr.bf16.mxu1 %v2678_v17 }
 0x66d   : > { %2454 = vmatpush3.bf16.msra.mxu1 %v2585_v12 }
 0x710   : > { %v1764_v21 = vpop.f32.mrf.mxu1 }
 0x711   : > { %v1765_v15 = vadd.f32 %v2282_v20, %v1764_v21 }
 0x712   : > { %v2429_v22 = vpop.f32.mrf.mxu1 }
 0x713   : > { %v3057_v23 = vadd.f32 %v1765_v15, %v2897_v2 }
 0x714   : > { %v1767_v24 = vpop.f32.mrf.mxu1 }
 0x715   : > { %v1768_v25 = vadd.f32 %v2282_v20, %v1767_v24  ;;  %v1773_v26 = vsel %vm880_vm2, %v3057_v23, 0.0 }
 0x716   : > { %1774 = vadd.xlane.f32.xlu0 %v1773_v26  ;;  %v2430_v27 = vpop.f32.mrf.mxu1 }
 0x717   : > { %v3062_v28 = vadd.f32 %v1768_v25, %v2900_v3 }
 0x719   : > { %v1776_v29 = vsel %vm884_vm3, %v3062_v28, 0.0 }
 0x71a   : > { %1777 = vadd.xlane.f32.xlu1 %v1776_v29 }
 0x79f   : > { %v1775_v30 = vpop.xlane.xlu0 %1774 }
 0x7a0   : > { %v1779_v31 = vmul.f32 0.03125, %v1775_v30 }
 0x7a2   : > { %v1781_v2 = vsub.f32 %v3057_v23, %v1779_v31 }
 0x7a3   : > { %v1778_v32 = vpop.xlane.xlu1 %1777 }
 0x7a4   : > { %v1780_v33 = vmul.f32 0.03125, %v1778_v32  ;;  %v1783_v34 = vmul.f32 %v1781_v2, %v1781_v2  ;;  %v1817_v58 = vmul.f32 %v2286_v56, %v1781_v2 }
 0x7a6   : > { %v1782_v35 = vsub.f32 %v3062_v28, %v1780_v33  ;;  %v1785_v36 = vsel %vm880_vm2, %v1783_v34, 0.0 }
 0x7a7   : > { %1786 = vadd.xlane.f32.xlu0 %v1785_v36 }
 0x7a8   : > { %v1784_v37 = vmul.f32 %v1782_v35, %v1782_v35  ;;  %v1818_v59 = vmul.f32 %v2286_v56, %v1782_v35 }
 0x7aa   : > { %v1788_v3 = vsel %vm884_vm3, %v1784_v37, 0.0 }
 0x7ab   : > { %1789 = vadd.xlane.f32.xlu0 %v1788_v3 }
 0x830   : > { %v1787_v41 = vpop.xlane.xlu0 %1786 }
 0x831   : > { %v1791_v42 = vmul.f32 0.032258064, %v1787_v41 }
 0x833   : > { %2626 = vrsqrt.f32 %v1791_v42  ;;  %vm1795_vm0 = vcmp.eq.f32.partialorder %v1791_v42, inf  ;;  %v1798_v47 = vand.u32 2147483648, %v1791_v42  ;;  %vm1797_vm1 = vcmp.eq.f32.partialorder %v1791_v42, 0.0 }
 0x834   : > { %v1790_v43 = vpop.xlane.xlu0 %1789 }
 0x835   : > { %v1792_v44 = vmul.f32 0.032258064, %v1790_v43 }
 0x837   : > { %2628 = vrsqrt.f32 %v1792_v44  ;;  %vm1802_vm4 = vcmp.eq.f32.partialorder %v1792_v44, inf  ;;  %v1805_v52 = vand.u32 2147483648, %v1792_v44  ;;  %vm1804_vm5 = vcmp.eq.f32.partialorder %v1792_v44, 0.0 }
 0x840   : > { %v2627_v45 = vpop.eup %2626 }
 0x841   : > { %v1794_v46 = vmul.f32 %v2627_v45, %v1791_v42 }
 0x843   : > { %v1796_v48 = vsel %vm1795_vm0, %v1791_v42, %v1794_v46 }
 0x844   : > { %v2629_v39 = vpop.eup %2628  ;;  %v1799_v49 = vsel %vm1797_vm1, %v1798_v47, %v1796_v48 }
 0x845   : > { %v1807_v50 = vadd.f32 1e-06, %v1799_v49  ;;  %v1801_v51 = vmul.f32 %v2629_v39, %v1792_v44 }
 0x847   : > { %2630 = vrcp.f32 %v1807_v50  ;;  %v1803_v53 = vsel %vm1802_vm4, %v1792_v44, %v1801_v51 }
 0x848   : > { %v1806_v54 = vsel %vm1804_vm5, %v1805_v52, %v1803_v53 }
 0x849   : > { %v1808_v55 = vadd.f32 1e-06, %v1806_v54 }
 0x84b   : > { %2632 = vrcp.f32 %v1808_v55 }
 0x854   : > { %v2631_v57 = vpop.eup %2630 }
 0x855   : > { %v1819_v60 = vmul.f32 %v2631_v57, %v1817_v58 }
 0x857   : > { %v1827_v0 = vadd.f32 %v2287_v62, %v1819_v60 }
 0x858   : > { %v2633_v61 = vpop.eup %2632 }
 0x859   : > { %v1820_v63 = vmul.f32 %v2633_v61, %v1818_v59 }
 0x85b   : > { %v1828_v1 = vadd.f32 %v2287_v62, %v1820_v63 }
 0x85d   : > { %v1829_v4 = vpack.c.bf16 %v1828_v1, %v1827_v0 }
 0x85f   : > { %2436 = vmatmul.mubr.msk.bf16.vlgmr.msra.gmra.mxu0 %vm880_vm2, %v1829_v4 }
 0x91f   : > { %v1885_v14 = vpop.f32.mrf.mxu0 }
 0x920   : > { %v1886_v16 = vadd.f32 %v2288_v13, %v1885_v14 }
 0x921   : > { %v2437_v18 = vpop.f32.mrf.mxu0 }
 0x922   : > { %v1894_v19 = vmul.f32 %v1886_v16, %v1886_v16  ;;  %v1892_v34 = vmul.f32 0.5, %v1886_v16 }
 0x923   : > { %v1888_v20 = vpop.f32.mrf.mxu0 }
 0x924   : > { %v1896_v21 = vmul.f32 %v1894_v19, %v1886_v16  ;;  %v1889_v15 = vadd.f32 %v2288_v13, %v1888_v20 }
 0x925   : > { %v2438_v22 = vpop.f32.mrf.mxu0 }
 0x926   : > { %v1898_v24 = vmul.f32 0.044715, %v1896_v21  ;;  %v1895_v25 = vmul.f32 %v1889_v15, %v1889_v15  ;;  %v1893_v35 = vmul.f32 0.5, %v1889_v15 }
 0x928   : > { %v1900_v26 = vadd.f32 %v1898_v24, %v1886_v16  ;;  %v1897_v27 = vmul.f32 %v1895_v25, %v1889_v15 }
 0x92a   : > { %v1902_v29 = vmul.f32 0.7978846, %v1900_v26  ;;  %v1899_v17 = vmul.f32 0.044715, %v1897_v27 }
 0x92c   : > { %2634 = vtanh.f32 %v1902_v29  ;;  %v1901_v30 = vadd.f32 %v1899_v17, %v1889_v15 }
 0x92e   : > { %v1903_v31 = vmul.f32 0.7978846, %v1901_v30 }
 0x930   : > { %2636 = vtanh.f32 %v1903_v31 }
 0x939   : > { %v2635_v2 = vpop.eup %2634 }
 0x93a   : > { %v1906_v32 = vadd.f32 1.0, %v2635_v2 }
 0x93c   : > { %v1908_v37 = vmul.f32 %v1906_v32, %v1892_v34 }
 0x93d   : > { %v2637_v33 = vpop.eup %2636 }
 0x93e   : > { %v1907_v36 = vadd.f32 1.0, %v2637_v33 }
 0x940   : > { %v1909_v3 = vmul.f32 %v1907_v36, %v1893_v35 }
 0x942   : > { %v1910_v38 = vpack.c.bf16 %v1909_v3, %v1908_v37 }
 0x944   : > { %2456 = vmatmul.mubr.bf16.vlgmr.msra.gmra.mxu1 %v1910_v38 }
 0xa04   : > { %v1999_v41 = vpop.f32.mrf.mxu1 }
 0xa05   : > { %v2000_v42 = vadd.f32 %v2292_v40, %v1999_v41 }
 0xa06   : > { %v2457_v43 = vpop.f32.mrf.mxu1 }
 0xa07   : > { %v2006_v44 = vadd.f32 %v2000_v42, %v3057_v23 }
 0xa08   : > { %v2002_v45 = vpop.f32.mrf.mxu1 }
 0xa09   : > { %2008 = vst.msk [vmem:[%s2891_s6] sm:$0xff] %vm880_vm2, %v2006_v44  ;;  %v2003_v46 = vadd.f32 %v2292_v40, %v2002_v45 }
 0xa0a   : > { %v2458_v47 = vpop.f32.mrf.mxu1 }
 0xa0b   : > { %v2007_v48 = vadd.f32 %v2003_v46, %v3062_v28 }
 0xa0d   : > { %2009 = vst.msk [vmem:[%s2891_s6 + $0x8] sm:$0x1] %vm884_vm3, %v2007_v48 }
 0xa0e PF: > { %s3202_s27 = sld [smem:[#allocation5_spill]] }
 0xa0f   : > { %s3203_s24 = sld [smem:[#allocation3_spill]] }
 0xa10   : > { %s3204_s25 = sld [smem:[#allocation4_spill]] }
 0xa11   : > { %s3205_s26 = sld [smem:[#allocation6_spill]] }
 0xa14   : > { %s27_s28 = sadd.s32 1, %s3202_s27   ;;  %s3206_s27 = sld [smem:[#allocation7_spill]] }
 0xa15   : > { %p24_p8 = scmp.ge.s32.totalorder %s27_s28, 6  }
 0xa17   :  { %26 = sbr.rel (!%p24_p8) target bundleno = 14 (0xe), region = 170 }

</bundles_post_ra>
